<compile_context>
chip_gen: v6e
topology: v6e:2x2x1
jax: 0.10.0
libtpu: 0.0.40
codegen_flags: <defaults>
</compile_context>

<pallas_src>
import jax
import jax.numpy as jnp
from jax.experimental import pallas as pl
from jax.experimental.pallas import tpu as pltpu


def _round_up(x, m):
    return (x + m - 1) // m * m


def _choose_label_tile(num_labels, desired):
    """Pick a lane-dense label tile (multiple of 128); prefer >= 2 tiles so the
    parallel label axis can shard across v7x's two TensorCores."""
    tile = min(desired, _round_up(num_labels, 128))
    if _round_up(num_labels, tile) <= tile and num_labels > 128:
        tile = max(128, _round_up((num_labels + 1) // 2, 128))
    padded = _round_up(num_labels, tile)
    return tile, padded


# ---------------------------------------------------------------------------
# Kernel 1: encoder = embedding bag (HBM row gather + weighted sum) fused with
#           the fine/residual transform.  grid=(B,), one batch row per step.
# ---------------------------------------------------------------------------
def _encode_kernel(ind_ref, xw_ref, emb_hbm, wfT_ref, bf_ref, h_ref,
                   rows, sems, h_acc):
    b = pl.program_id(0)
    S = rows.shape[0]

    # Gather the S embedding rows of this batch element directly from HBM.
    # TODO(synk): for large S, switch to pl.loop + a fixed-depth DMA ring
    # instead of an S-way unroll / S semaphores.
    for s in range(S):
        pltpu.make_async_copy(
            emb_hbm.at[pl.ds(ind_ref[b, s], 1), :],
            rows.at[pl.ds(s, 1), :],
            sems.at[s],
        ).start()
    for s in range(S):
        pltpu.make_async_copy(
            emb_hbm.at[pl.ds(0, 1), :],
            rows.at[pl.ds(s, 1), :],
            sems.at[s],
        ).wait()

    # Coarse: weighted sum (padding indices already carry weight 0).
    xw_row = xw_ref[pl.ds(b, 1), :]                                    # [1, S]
    e = jnp.dot(xw_row, rows[...], preferred_element_type=jnp.float32)  # [1, D]

    # Fine: residual block, bf16 weights / f32 accumulation on the MXU.
    z = jnp.dot(e.astype(wfT_ref.dtype), wfT_ref[...],
                preferred_element_type=jnp.float32) + bf_ref[...]
    h_acc[pl.ds(b, 1), :] = jnp.maximum(z, 0.0) + e

    # Single lane-dense bf16 writeback at the end (avoids per-row packed
    # sub-word stores into the bf16 output block).
    @pl.when(b == pl.num_programs(0) - 1)
    def _():
        h_ref[...] = h_acc[...].astype(h_ref.dtype)


# ---------------------------------------------------------------------------
# Kernel 2: classifier   logits[:, tile] = h @ WcT[:, tile] + bc[tile]
# (independent label tiles -> "parallel" grid axis, no scratch carry)
# ---------------------------------------------------------------------------
def _classifier_kernel(h_ref, wcT_ref, bc_ref, out_ref):
    out_ref[...] = (
        jnp.dot(h_ref[...], wcT_ref[...], preferred_element_type=jnp.float32)
        + bc_ref[...]
    ).astype(out_ref.dtype)
    # TODO(synk): optional bf16 logits (halves B*L writeback) and fp8 (v7x) /
    # int8 (v5e/v6e) classifier-weight compression if accuracy allows.


# ---------------------------------------------------------------------------
# One-time (model init) parameter preparation -- hoisted out of the forward.
# ---------------------------------------------------------------------------
def prepare_deepxmlf_params(wf, bf, wc, bc, *, tile_labels=2048,
                            weight_dtype=jnp.bfloat16):
    D = wf.shape[0]
    L = wc.shape[0]
    tile, Lp = _choose_label_tile(L, tile_labels)
    wfT = wf.T.astype(weight_dtype)                     # [D, D]
    bf2 = bf.reshape(1, D).astype(jnp.float32)          # [1, D]
    wcT = wc.T.astype(weight_dtype)                     # [D, L]
    bc2 = bc.reshape(1, L).astype(jnp.float32)          # [1, L]
    if Lp != L:
        wcT = jnp.pad(wcT, ((0, 0), (0, Lp - L)))
        bc2 = jnp.pad(bc2, ((0, 0), (0, Lp - L)))
    return {"wfT": wfT, "bf": bf2, "wcT": wcT, "bc": bc2,
            "num_labels": L, "tile_labels": tile}


def deepxmlf_forward(x_w, x_ind, emb, params):
    """Full DeepXMLf forward (sparse features).

    x_w    : [B, S] float32  per-feature weights
    x_ind  : [B, S] int      feature indices (0 == padding)
    emb    : [V, D] float32  token embedding table (row 0 is padding)
    params : dict from prepare_deepxmlf_params
    returns logits [B, L] float32
    """
    B, S = x_w.shape
    V, D = emb.shape
    wfT, bf2 = params["wfT"], params["bf"]
    wcT, bc2 = params["wcT"], params["bc"]
    L = params["num_labels"]
    tile = params["tile_labels"]
    Lp = wcT.shape[1]
    n_tiles = Lp // tile

    # padding_idx == 0 contributes nothing: zero its weight (O(B*S)).
    x_w = jnp.where(x_ind == 0, jnp.zeros_like(x_w), x_w).astype(jnp.float32)
    x_ind = x_ind.astype(jnp.int32)

    # ---- encoder: embedding bag + residual transform, bf16 h ---------------
    h = pl.pallas_call(
        _encode_kernel,
        out_shape=jax.ShapeDtypeStruct((B, D), jnp.bfloat16),
        grid_spec=pltpu.PrefetchScalarGridSpec(
            num_scalar_prefetch=1,                       # x_ind -> SMEM
            grid=(B,),
            in_specs=[
                pl.BlockSpec((B, S), lambda b, ind: (0, 0)),   # x_w (resident)
                pl.BlockSpec(memory_space=pl.ANY),             # emb stays in HBM
                pl.BlockSpec((D, D), lambda b, ind: (0, 0)),   # WfT (resident)
                pl.BlockSpec((1, D), lambda b, ind: (0, 0)),   # bf
            ],
            out_specs=pl.BlockSpec((B, D), lambda b, ind: (0, 0)),
            scratch_shapes=[
                pltpu.VMEM((S, D), jnp.float32),      # gathered rows
                pltpu.SemaphoreType.DMA((S,)),        # one sem per row DMA
                pltpu.VMEM((B, D), jnp.float32),      # f32 h accumulator
            ],
        ),
        compiler_params=pltpu.CompilerParams(
            dimension_semantics=("arbitrary",),        # output revisited
        ),
    )(x_ind, x_w, emb, wfT, bf2)
    # TODO(synk): tile the batch (several rows per grid step) for large B to
    # amortize the ~0.35us grid-step overhead of the gather loop.

    # ---- classifier: wide label tiles, parallel across tiles / TCs ---------
    wbytes = jnp.dtype(wcT.dtype).itemsize
    tile_ws = (D * tile * wbytes          # WcT tile
               + tile * 4                 # bc tile
               + B * tile * 4             # out tile
               + B * D * 2)               # resident bf16 h
    # actual working set (x2 double buffering) + headroom, v7x-safe cap.
    vmem_limit = int(min(2.5 * tile_ws + (8 << 20), 48 << 20))

    cost = pl.CostEstimate(
        flops=2 * B * D * Lp,
        transcendentals=0,
        bytes_accessed=D * Lp * wbytes + B * D * 2 + B * Lp * 4 + Lp * 4,
    )

    logits = pl.pallas_call(
        _classifier_kernel,
        out_shape=jax.ShapeDtypeStruct((B, Lp), jnp.float32),
        grid_spec=pltpu.PrefetchScalarGridSpec(
            num_scalar_prefetch=0,
            grid=(n_tiles,),
            in_specs=[
                pl.BlockSpec((B, D), lambda j: (0, 0)),        # h (resident)
                pl.BlockSpec((D, tile), lambda j: (0, j)),     # WcT tile
                # TODO(synk): pipeline_mode=pl.Buffered(3) on WcT if profiling
                # still shows exposed DMA at wide tiles.
                pl.BlockSpec((1, tile), lambda j: (0, j)),     # bc tile
            ],
            out_specs=pl.BlockSpec((B, tile), lambda j: (0, j)),
        ),
        compiler_params=pltpu.CompilerParams(
            dimension_semantics=("parallel",),         # independent label tiles
            vmem_limit_bytes=vmem_limit,
        ),
        cost_estimate=cost,
    )(h, wcT, bc2)

    return logits[:, :L]


# ---------------------------------------------------------------------------
# References
# ---------------------------------------------------------------------------
def _reference_forward_f32(x_w, x_ind, emb, wf, bf, wc, bc):
    x_w = jnp.where(x_ind == 0, jnp.zeros_like(x_w), x_w)
    e = jnp.einsum("bs,bsd->bd", x_w, emb[x_ind])
    h = jnp.maximum(e @ wf.T + bf, 0.0) + e
    return h @ wc.T + bc


def _reference_forward_matched(x_w, x_ind, emb, wf, bf, wc, bc,
                               weight_dtype=jnp.bfloat16):
    # Same arithmetic structure as the kernel path: bf16 operands, f32 acc.
    x_w = jnp.where(x_ind == 0, jnp.zeros_like(x_w), x_w)
    e = jnp.einsum("bs,bsd->bd", x_w, emb[x_ind])
    z = jnp.dot(e.astype(weight_dtype), wf.T.astype(weight_dtype),
                preferred_element_type=jnp.float32) + bf
    h = (jnp.maximum(z, 0.0) + e).astype(weight_dtype)
    return jnp.dot(h, wc.T.astype(weight_dtype),
                   preferred_element_type=jnp.float32) + bc


if __name__ == "__main__":
    key = jax.random.PRNGKey(0)
    B, S, V, D, L = 8, 16, 512, 128, 2048    # small but TPU-tile friendly

    k = jax.random.split(key, 6)
    x_w = jax.random.uniform(k[0], (B, S), dtype=jnp.float32)
    x_ind = jax.random.randint(k[1], (B, S), 0, V, dtype=jnp.int32)
    emb = jax.random.normal(k[2], (V, D), dtype=jnp.float32) * 0.05
    wf = jax.random.normal(k[3], (D, D), dtype=jnp.float32) * 0.05
    bf = jnp.zeros((D,), dtype=jnp.float32)
    wc = jax.random.normal(k[4], (L, D), dtype=jnp.float32) * 0.05
    bc = jax.random.normal(k[5], (L,), dtype=jnp.float32) * 0.01

    # One-time weight prep (model init) -- not part of the per-forward cost.
    params = prepare_deepxmlf_params(wf, bf, wc, bc, tile_labels=2048)
    jax.block_until_ready(params)

    logits = deepxmlf_forward(x_w, x_ind, emb, params)
    jax.block_until_ready(logits)
    assert logits.shape == (B, L)

    # Tight check against the precision-matched reference.
    ref_m = _reference_forward_matched(x_w, x_ind, emb, wf, bf, wc, bc)
    err_m = float(jnp.max(jnp.abs(logits - ref_m)))
    assert jnp.allclose(logits, ref_m, atol=3e-3, rtol=3e-3), err_m

    # Loose sanity check against the pure-f32 module semantics.
    ref_f = _reference_forward_f32(x_w, x_ind, emb, wf, bf, wc, bc)
    err_f = float(jnp.max(jnp.abs(logits - ref_f)))
    assert jnp.allclose(logits, ref_f, atol=3e-2, rtol=3e-2), err_f

    print("KERNEL_OK")
</pallas_src>

<mosaic_0001>
module attributes {stable_mosaic.version = 11 : i64} {
  func.func @_encode_kernel(%arg0: i32, %arg1: memref<8x16xi32, #tpu.memory_space<smem>>, %arg2: memref<8x16xf32, #tpu.memory_space<vmem>>, %arg3: memref<512x128xf32, #tpu.memory_space<any>>, %arg4: memref<128x128xbf16, #tpu.memory_space<vmem>>, %arg5: memref<1x128xf32, #tpu.memory_space<vmem>>, %arg6: memref<8x128xbf16, #tpu.memory_space<vmem>>, %arg7: memref<16x128xf32, #tpu.memory_space<vmem>>, %arg8: memref<16x!tpu.dma_semaphore, #tpu.memory_space<semaphore_mem>>, %arg9: memref<8x128xf32, #tpu.memory_space<vmem>>) attributes {dimension_semantics = [#tpu.dimension_semantics<arbitrary>], iteration_bounds = array<i64: 8>, scalar_prefetch = 1 : i64, scratch_operands = 3 : i64, tpu.core_type = #tpu.core_type<tc>, window_params = [{pipeline_mode = #tpu.pipeline_mode<synchronous>, transform_indices = @transform_0, window_bounds = array<i64: 8, 16>}, {}, {pipeline_mode = #tpu.pipeline_mode<synchronous>, transform_indices = @transform_2, window_bounds = array<i64: 128, 128>}, {pipeline_mode = #tpu.pipeline_mode<synchronous>, transform_indices = @transform_3, window_bounds = array<i64: 1, 128>}, {pipeline_mode = #tpu.pipeline_mode<synchronous>, transform_indices = @transform_4, window_bounds = array<i64: 8, 128>}]} {
    %0 = arith.index_cast %arg0 : i32 to index
    %c0 = arith.constant 0 : index
    %1 = memref.load %arg1[%0, %c0] : memref<8x16xi32, #tpu.memory_space<smem>>
    %c0_i32 = arith.constant 0 : i32
    %c0_i32_0 = arith.constant 0 : i32
    %2 = tpu.memref_slice %arg3[%1, %c0_i32_0] : memref<512x128xf32, #tpu.memory_space<any>> -> memref<1x128xf32, #tpu.memory_space<any>>
    %c0_i32_1 = arith.constant 0 : i32
    %c0_i32_2 = arith.constant 0 : i32
    %3 = tpu.memref_slice %arg7[%c0_i32_1, %c0_i32_2] : memref<16x128xf32, #tpu.memory_space<vmem>> -> memref<1x128xf32, #tpu.memory_space<vmem>>
    %4 = tpu.memref_slice %arg8[%c0_i32] : memref<16x!tpu.dma_semaphore, #tpu.memory_space<semaphore_mem>> -> memref<1x!tpu.dma_semaphore, #tpu.memory_space<semaphore_mem>>
    %5 = tpu.memref_squeeze %4 : memref<1x!tpu.dma_semaphore, #tpu.memory_space<semaphore_mem>> -> memref<!tpu.dma_semaphore, #tpu.memory_space<semaphore_mem>>
    tpu.enqueue_dma source(%2 : memref<1x128xf32, #tpu.memory_space<any>>) target(%3 : memref<1x128xf32, #tpu.memory_space<vmem>>) target_semaphore(%5 : memref<!tpu.dma_semaphore, #tpu.memory_space<semaphore_mem>>)
    %6 = arith.index_cast %arg0 : i32 to index
    %c1 = arith.constant 1 : index
    %7 = memref.load %arg1[%6, %c1] : memref<8x16xi32, #tpu.memory_space<smem>>
    %c1_i32 = arith.constant 1 : i32
    %c0_i32_3 = arith.constant 0 : i32
    %8 = tpu.memref_slice %arg3[%7, %c0_i32_3] : memref<512x128xf32, #tpu.memory_space<any>> -> memref<1x128xf32, #tpu.memory_space<any>>
    %c1_i32_4 = arith.constant 1 : i32
    %c0_i32_5 = arith.constant 0 : i32
    %9 = tpu.memref_slice %arg7[%c1_i32_4, %c0_i32_5] : memref<16x128xf32, #tpu.memory_space<vmem>> -> memref<1x128xf32, #tpu.memory_space<vmem>>
    %10 = tpu.memref_slice %arg8[%c1_i32] : memref<16x!tpu.dma_semaphore, #tpu.memory_space<semaphore_mem>> -> memref<1x!tpu.dma_semaphore, #tpu.memory_space<semaphore_mem>>
    %11 = tpu.memref_squeeze %10 : memref<1x!tpu.dma_semaphore, #tpu.memory_space<semaphore_mem>> -> memref<!tpu.dma_semaphore, #tpu.memory_space<semaphore_mem>>
    tpu.enqueue_dma source(%8 : memref<1x128xf32, #tpu.memory_space<any>>) target(%9 : memref<1x128xf32, #tpu.memory_space<vmem>>) target_semaphore(%11 : memref<!tpu.dma_semaphore, #tpu.memory_space<semaphore_mem>>)
    %12 = arith.index_cast %arg0 : i32 to index
    %c2 = arith.constant 2 : index
    %13 = memref.load %arg1[%12, %c2] : memref<8x16xi32, #tpu.memory_space<smem>>
    %c2_i32 = arith.constant 2 : i32
    %c0_i32_6 = arith.constant 0 : i32
    %14 = tpu.memref_slice %arg3[%13, %c0_i32_6] : memref<512x128xf32, #tpu.memory_space<any>> -> memref<1x128xf32, #tpu.memory_space<any>>
    %c2_i32_7 = arith.constant 2 : i32
    %c0_i32_8 = arith.constant 0 : i32
    %15 = tpu.memref_slice %arg7[%c2_i32_7, %c0_i32_8] : memref<16x128xf32, #tpu.memory_space<vmem>> -> memref<1x128xf32, #tpu.memory_space<vmem>>
    %16 = tpu.memref_slice %arg8[%c2_i32] : memref<16x!tpu.dma_semaphore, #tpu.memory_space<semaphore_mem>> -> memref<1x!tpu.dma_semaphore, #tpu.memory_space<semaphore_mem>>
    %17 = tpu.memref_squeeze %16 : memref<1x!tpu.dma_semaphore, #tpu.memory_space<semaphore_mem>> -> memref<!tpu.dma_semaphore, #tpu.memory_space<semaphore_mem>>
    tpu.enqueue_dma source(%14 : memref<1x128xf32, #tpu.memory_space<any>>) target(%15 : memref<1x128xf32, #tpu.memory_space<vmem>>) target_semaphore(%17 : memref<!tpu.dma_semaphore, #tpu.memory_space<semaphore_mem>>)
    %18 = arith.index_cast %arg0 : i32 to index
    %c3 = arith.constant 3 : index
    %19 = memref.load %arg1[%18, %c3] : memref<8x16xi32, #tpu.memory_space<smem>>
    %c3_i32 = arith.constant 3 : i32
    %c0_i32_9 = arith.constant 0 : i32
    %20 = tpu.memref_slice %arg3[%19, %c0_i32_9] : memref<512x128xf32, #tpu.memory_space<any>> -> memref<1x128xf32, #tpu.memory_space<any>>
    %c3_i32_10 = arith.constant 3 : i32
    %c0_i32_11 = arith.constant 0 : i32
    %21 = tpu.memref_slice %arg7[%c3_i32_10, %c0_i32_11] : memref<16x128xf32, #tpu.memory_space<vmem>> -> memref<1x128xf32, #tpu.memory_space<vmem>>
    %22 = tpu.memref_slice %arg8[%c3_i32] : memref<16x!tpu.dma_semaphore, #tpu.memory_space<semaphore_mem>> -> memref<1x!tpu.dma_semaphore, #tpu.memory_space<semaphore_mem>>
    %23 = tpu.memref_squeeze %22 : memref<1x!tpu.dma_semaphore, #tpu.memory_space<semaphore_mem>> -> memref<!tpu.dma_semaphore, #tpu.memory_space<semaphore_mem>>
    tpu.enqueue_dma source(%20 : memref<1x128xf32, #tpu.memory_space<any>>) target(%21 : memref<1x128xf32, #tpu.memory_space<vmem>>) target_semaphore(%23 : memref<!tpu.dma_semaphore, #tpu.memory_space<semaphore_mem>>)
    %24 = arith.index_cast %arg0 : i32 to index
    %c4 = arith.constant 4 : index
    %25 = memref.load %arg1[%24, %c4] : memref<8x16xi32, #tpu.memory_space<smem>>
    %c4_i32 = arith.constant 4 : i32
    %c0_i32_12 = arith.constant 0 : i32
    %26 = tpu.memref_slice %arg3[%25, %c0_i32_12] : memref<512x128xf32, #tpu.memory_space<any>> -> memref<1x128xf32, #tpu.memory_space<any>>
    %c4_i32_13 = arith.constant 4 : i32
    %c0_i32_14 = arith.constant 0 : i32
    %27 = tpu.memref_slice %arg7[%c4_i32_13, %c0_i32_14] : memref<16x128xf32, #tpu.memory_space<vmem>> -> memref<1x128xf32, #tpu.memory_space<vmem>>
    %28 = tpu.memref_slice %arg8[%c4_i32] : memref<16x!tpu.dma_semaphore, #tpu.memory_space<semaphore_mem>> -> memref<1x!tpu.dma_semaphore, #tpu.memory_space<semaphore_mem>>
    %29 = tpu.memref_squeeze %28 : memref<1x!tpu.dma_semaphore, #tpu.memory_space<semaphore_mem>> -> memref<!tpu.dma_semaphore, #tpu.memory_space<semaphore_mem>>
    tpu.enqueue_dma source(%26 : memref<1x128xf32, #tpu.memory_space<any>>) target(%27 : memref<1x128xf32, #tpu.memory_space<vmem>>) target_semaphore(%29 : memref<!tpu.dma_semaphore, #tpu.memory_space<semaphore_mem>>)
    %30 = arith.index_cast %arg0 : i32 to index
    %c5 = arith.constant 5 : index
    %31 = memref.load %arg1[%30, %c5] : memref<8x16xi32, #tpu.memory_space<smem>>
    %c5_i32 = arith.constant 5 : i32
    %c0_i32_15 = arith.constant 0 : i32
    %32 = tpu.memref_slice %arg3[%31, %c0_i32_15] : memref<512x128xf32, #tpu.memory_space<any>> -> memref<1x128xf32, #tpu.memory_space<any>>
    %c5_i32_16 = arith.constant 5 : i32
    %c0_i32_17 = arith.constant 0 : i32
    %33 = tpu.memref_slice %arg7[%c5_i32_16, %c0_i32_17] : memref<16x128xf32, #tpu.memory_space<vmem>> -> memref<1x128xf32, #tpu.memory_space<vmem>>
    %34 = tpu.memref_slice %arg8[%c5_i32] : memref<16x!tpu.dma_semaphore, #tpu.memory_space<semaphore_mem>> -> memref<1x!tpu.dma_semaphore, #tpu.memory_space<semaphore_mem>>
    %35 = tpu.memref_squeeze %34 : memref<1x!tpu.dma_semaphore, #tpu.memory_space<semaphore_mem>> -> memref<!tpu.dma_semaphore, #tpu.memory_space<semaphore_mem>>
    tpu.enqueue_dma source(%32 : memref<1x128xf32, #tpu.memory_space<any>>) target(%33 : memref<1x128xf32, #tpu.memory_space<vmem>>) target_semaphore(%35 : memref<!tpu.dma_semaphore, #tpu.memory_space<semaphore_mem>>)
    %36 = arith.index_cast %arg0 : i32 to index
    %c6 = arith.constant 6 : index
    %37 = memref.load %arg1[%36, %c6] : memref<8x16xi32, #tpu.memory_space<smem>>
    %c6_i32 = arith.constant 6 : i32
    %c0_i32_18 = arith.constant 0 : i32
    %38 = tpu.memref_slice %arg3[%37, %c0_i32_18] : memref<512x128xf32, #tpu.memory_space<any>> -> memref<1x128xf32, #tpu.memory_space<any>>
    %c6_i32_19 = arith.constant 6 : i32
    %c0_i32_20 = arith.constant 0 : i32
    %39 = tpu.memref_slice %arg7[%c6_i32_19, %c0_i32_20] : memref<16x128xf32, #tpu.memory_space<vmem>> -> memref<1x128xf32, #tpu.memory_space<vmem>>
    %40 = tpu.memref_slice %arg8[%c6_i32] : memref<16x!tpu.dma_semaphore, #tpu.memory_space<semaphore_mem>> -> memref<1x!tpu.dma_semaphore, #tpu.memory_space<semaphore_mem>>
    %41 = tpu.memref_squeeze %40 : memref<1x!tpu.dma_semaphore, #tpu.memory_space<semaphore_mem>> -> memref<!tpu.dma_semaphore, #tpu.memory_space<semaphore_mem>>
    tpu.enqueue_dma source(%38 : memref<1x128xf32, #tpu.memory_space<any>>) target(%39 : memref<1x128xf32, #tpu.memory_space<vmem>>) target_semaphore(%41 : memref<!tpu.dma_semaphore, #tpu.memory_space<semaphore_mem>>)
    %42 = arith.index_cast %arg0 : i32 to index
    %c7 = arith.constant 7 : index
    %43 = memref.load %arg1[%42, %c7] : memref<8x16xi32, #tpu.memory_space<smem>>
    %c7_i32 = arith.constant 7 : i32
    %c0_i32_21 = arith.constant 0 : i32
    %44 = tpu.memref_slice %arg3[%43, %c0_i32_21] : memref<512x128xf32, #tpu.memory_space<any>> -> memref<1x128xf32, #tpu.memory_space<any>>
    %c7_i32_22 = arith.constant 7 : i32
    %c0_i32_23 = arith.constant 0 : i32
    %45 = tpu.memref_slice %arg7[%c7_i32_22, %c0_i32_23] : memref<16x128xf32, #tpu.memory_space<vmem>> -> memref<1x128xf32, #tpu.memory_space<vmem>>
    %46 = tpu.memref_slice %arg8[%c7_i32] : memref<16x!tpu.dma_semaphore, #tpu.memory_space<semaphore_mem>> -> memref<1x!tpu.dma_semaphore, #tpu.memory_space<semaphore_mem>>
    %47 = tpu.memref_squeeze %46 : memref<1x!tpu.dma_semaphore, #tpu.memory_space<semaphore_mem>> -> memref<!tpu.dma_semaphore, #tpu.memory_space<semaphore_mem>>
    tpu.enqueue_dma source(%44 : memref<1x128xf32, #tpu.memory_space<any>>) target(%45 : memref<1x128xf32, #tpu.memory_space<vmem>>) target_semaphore(%47 : memref<!tpu.dma_semaphore, #tpu.memory_space<semaphore_mem>>)
    %48 = arith.index_cast %arg0 : i32 to index
    %c8 = arith.constant 8 : index
    %49 = memref.load %arg1[%48, %c8] : memref<8x16xi32, #tpu.memory_space<smem>>
    %c8_i32 = arith.constant 8 : i32
    %c0_i32_24 = arith.constant 0 : i32
    %50 = tpu.memref_slice %arg3[%49, %c0_i32_24] : memref<512x128xf32, #tpu.memory_space<any>> -> memref<1x128xf32, #tpu.memory_space<any>>
    %c8_i32_25 = arith.constant 8 : i32
    %c0_i32_26 = arith.constant 0 : i32
    %51 = tpu.memref_slice %arg7[%c8_i32_25, %c0_i32_26] : memref<16x128xf32, #tpu.memory_space<vmem>> -> memref<1x128xf32, #tpu.memory_space<vmem>>
    %52 = tpu.memref_slice %arg8[%c8_i32] : memref<16x!tpu.dma_semaphore, #tpu.memory_space<semaphore_mem>> -> memref<1x!tpu.dma_semaphore, #tpu.memory_space<semaphore_mem>>
    %53 = tpu.memref_squeeze %52 : memref<1x!tpu.dma_semaphore, #tpu.memory_space<semaphore_mem>> -> memref<!tpu.dma_semaphore, #tpu.memory_space<semaphore_mem>>
    tpu.enqueue_dma source(%50 : memref<1x128xf32, #tpu.memory_space<any>>) target(%51 : memref<1x128xf32, #tpu.memory_space<vmem>>) target_semaphore(%53 : memref<!tpu.dma_semaphore, #tpu.memory_space<semaphore_mem>>)
    %54 = arith.index_cast %arg0 : i32 to index
    %c9 = arith.constant 9 : index
    %55 = memref.load %arg1[%54, %c9] : memref<8x16xi32, #tpu.memory_space<smem>>
    %c9_i32 = arith.constant 9 : i32
    %c0_i32_27 = arith.constant 0 : i32
    %56 = tpu.memref_slice %arg3[%55, %c0_i32_27] : memref<512x128xf32, #tpu.memory_space<any>> -> memref<1x128xf32, #tpu.memory_space<any>>
    %c9_i32_28 = arith.constant 9 : i32
    %c0_i32_29 = arith.constant 0 : i32
    %57 = tpu.memref_slice %arg7[%c9_i32_28, %c0_i32_29] : memref<16x128xf32, #tpu.memory_space<vmem>> -> memref<1x128xf32, #tpu.memory_space<vmem>>
    %58 = tpu.memref_slice %arg8[%c9_i32] : memref<16x!tpu.dma_semaphore, #tpu.memory_space<semaphore_mem>> -> memref<1x!tpu.dma_semaphore, #tpu.memory_space<semaphore_mem>>
    %59 = tpu.memref_squeeze %58 : memref<1x!tpu.dma_semaphore, #tpu.memory_space<semaphore_mem>> -> memref<!tpu.dma_semaphore, #tpu.memory_space<semaphore_mem>>
    tpu.enqueue_dma source(%56 : memref<1x128xf32, #tpu.memory_space<any>>) target(%57 : memref<1x128xf32, #tpu.memory_space<vmem>>) target_semaphore(%59 : memref<!tpu.dma_semaphore, #tpu.memory_space<semaphore_mem>>)
    %60 = arith.index_cast %arg0 : i32 to index
    %c10 = arith.constant 10 : index
    %61 = memref.load %arg1[%60, %c10] : memref<8x16xi32, #tpu.memory_space<smem>>
    %c10_i32 = arith.constant 10 : i32
    %c0_i32_30 = arith.constant 0 : i32
    %62 = tpu.memref_slice %arg3[%61, %c0_i32_30] : memref<512x128xf32, #tpu.memory_space<any>> -> memref<1x128xf32, #tpu.memory_space<any>>
    %c10_i32_31 = arith.constant 10 : i32
    %c0_i32_32 = arith.constant 0 : i32
    %63 = tpu.memref_slice %arg7[%c10_i32_31, %c0_i32_32] : memref<16x128xf32, #tpu.memory_space<vmem>> -> memref<1x128xf32, #tpu.memory_space<vmem>>
    %64 = tpu.memref_slice %arg8[%c10_i32] : memref<16x!tpu.dma_semaphore, #tpu.memory_space<semaphore_mem>> -> memref<1x!tpu.dma_semaphore, #tpu.memory_space<semaphore_mem>>
    %65 = tpu.memref_squeeze %64 : memref<1x!tpu.dma_semaphore, #tpu.memory_space<semaphore_mem>> -> memref<!tpu.dma_semaphore, #tpu.memory_space<semaphore_mem>>
    tpu.enqueue_dma source(%62 : memref<1x128xf32, #tpu.memory_space<any>>) target(%63 : memref<1x128xf32, #tpu.memory_space<vmem>>) target_semaphore(%65 : memref<!tpu.dma_semaphore, #tpu.memory_space<semaphore_mem>>)
    %66 = arith.index_cast %arg0 : i32 to index
    %c11 = arith.constant 11 : index
    %67 = memref.load %arg1[%66, %c11] : memref<8x16xi32, #tpu.memory_space<smem>>
    %c11_i32 = arith.constant 11 : i32
    %c0_i32_33 = arith.constant 0 : i32
    %68 = tpu.memref_slice %arg3[%67, %c0_i32_33] : memref<512x128xf32, #tpu.memory_space<any>> -> memref<1x128xf32, #tpu.memory_space<any>>
    %c11_i32_34 = arith.constant 11 : i32
    %c0_i32_35 = arith.constant 0 : i32
    %69 = tpu.memref_slice %arg7[%c11_i32_34, %c0_i32_35] : memref<16x128xf32, #tpu.memory_space<vmem>> -> memref<1x128xf32, #tpu.memory_space<vmem>>
    %70 = tpu.memref_slice %arg8[%c11_i32] : memref<16x!tpu.dma_semaphore, #tpu.memory_space<semaphore_mem>> -> memref<1x!tpu.dma_semaphore, #tpu.memory_space<semaphore_mem>>
    %71 = tpu.memref_squeeze %70 : memref<1x!tpu.dma_semaphore, #tpu.memory_space<semaphore_mem>> -> memref<!tpu.dma_semaphore, #tpu.memory_space<semaphore_mem>>
    tpu.enqueue_dma source(%68 : memref<1x128xf32, #tpu.memory_space<any>>) target(%69 : memref<1x128xf32, #tpu.memory_space<vmem>>) target_semaphore(%71 : memref<!tpu.dma_semaphore, #tpu.memory_space<semaphore_mem>>)
    %72 = arith.index_cast %arg0 : i32 to index
    %c12 = arith.constant 12 : index
    %73 = memref.load %arg1[%72, %c12] : memref<8x16xi32, #tpu.memory_space<smem>>
    %c12_i32 = arith.constant 12 : i32
    %c0_i32_36 = arith.constant 0 : i32
    %74 = tpu.memref_slice %arg3[%73, %c0_i32_36] : memref<512x128xf32, #tpu.memory_space<any>> -> memref<1x128xf32, #tpu.memory_space<any>>
    %c12_i32_37 = arith.constant 12 : i32
    %c0_i32_38 = arith.constant 0 : i32
    %75 = tpu.memref_slice %arg7[%c12_i32_37, %c0_i32_38] : memref<16x128xf32, #tpu.memory_space<vmem>> -> memref<1x128xf32, #tpu.memory_space<vmem>>
    %76 = tpu.memref_slice %arg8[%c12_i32] : memref<16x!tpu.dma_semaphore, #tpu.memory_space<semaphore_mem>> -> memref<1x!tpu.dma_semaphore, #tpu.memory_space<semaphore_mem>>
    %77 = tpu.memref_squeeze %76 : memref<1x!tpu.dma_semaphore, #tpu.memory_space<semaphore_mem>> -> memref<!tpu.dma_semaphore, #tpu.memory_space<semaphore_mem>>
    tpu.enqueue_dma source(%74 : memref<1x128xf32, #tpu.memory_space<any>>) target(%75 : memref<1x128xf32, #tpu.memory_space<vmem>>) target_semaphore(%77 : memref<!tpu.dma_semaphore, #tpu.memory_space<semaphore_mem>>)
    %78 = arith.index_cast %arg0 : i32 to index
    %c13 = arith.constant 13 : index
    %79 = memref.load %arg1[%78, %c13] : memref<8x16xi32, #tpu.memory_space<smem>>
    %c13_i32 = arith.constant 13 : i32
    %c0_i32_39 = arith.constant 0 : i32
    %80 = tpu.memref_slice %arg3[%79, %c0_i32_39] : memref<512x128xf32, #tpu.memory_space<any>> -> memref<1x128xf32, #tpu.memory_space<any>>
    %c13_i32_40 = arith.constant 13 : i32
    %c0_i32_41 = arith.constant 0 : i32
    %81 = tpu.memref_slice %arg7[%c13_i32_40, %c0_i32_41] : memref<16x128xf32, #tpu.memory_space<vmem>> -> memref<1x128xf32, #tpu.memory_space<vmem>>
    %82 = tpu.memref_slice %arg8[%c13_i32] : memref<16x!tpu.dma_semaphore, #tpu.memory_space<semaphore_mem>> -> memref<1x!tpu.dma_semaphore, #tpu.memory_space<semaphore_mem>>
    %83 = tpu.memref_squeeze %82 : memref<1x!tpu.dma_semaphore, #tpu.memory_space<semaphore_mem>> -> memref<!tpu.dma_semaphore, #tpu.memory_space<semaphore_mem>>
    tpu.enqueue_dma source(%80 : memref<1x128xf32, #tpu.memory_space<any>>) target(%81 : memref<1x128xf32, #tpu.memory_space<vmem>>) target_semaphore(%83 : memref<!tpu.dma_semaphore, #tpu.memory_space<semaphore_mem>>)
    %84 = arith.index_cast %arg0 : i32 to index
    %c14 = arith.constant 14 : index
    %85 = memref.load %arg1[%84, %c14] : memref<8x16xi32, #tpu.memory_space<smem>>
    %c14_i32 = arith.constant 14 : i32
    %c0_i32_42 = arith.constant 0 : i32
    %86 = tpu.memref_slice %arg3[%85, %c0_i32_42] : memref<512x128xf32, #tpu.memory_space<any>> -> memref<1x128xf32, #tpu.memory_space<any>>
    %c14_i32_43 = arith.constant 14 : i32
    %c0_i32_44 = arith.constant 0 : i32
    %87 = tpu.memref_slice %arg7[%c14_i32_43, %c0_i32_44] : memref<16x128xf32, #tpu.memory_space<vmem>> -> memref<1x128xf32, #tpu.memory_space<vmem>>
    %88 = tpu.memref_slice %arg8[%c14_i32] : memref<16x!tpu.dma_semaphore, #tpu.memory_space<semaphore_mem>> -> memref<1x!tpu.dma_semaphore, #tpu.memory_space<semaphore_mem>>
    %89 = tpu.memref_squeeze %88 : memref<1x!tpu.dma_semaphore, #tpu.memory_space<semaphore_mem>> -> memref<!tpu.dma_semaphore, #tpu.memory_space<semaphore_mem>>
    tpu.enqueue_dma source(%86 : memref<1x128xf32, #tpu.memory_space<any>>) target(%87 : memref<1x128xf32, #tpu.memory_space<vmem>>) target_semaphore(%89 : memref<!tpu.dma_semaphore, #tpu.memory_space<semaphore_mem>>)
    %90 = arith.index_cast %arg0 : i32 to index
    %c15 = arith.constant 15 : index
    %91 = memref.load %arg1[%90, %c15] : memref<8x16xi32, #tpu.memory_space<smem>>
    %c15_i32 = arith.constant 15 : i32
    %c0_i32_45 = arith.constant 0 : i32
    %92 = tpu.memref_slice %arg3[%91, %c0_i32_45] : memref<512x128xf32, #tpu.memory_space<any>> -> memref<1x128xf32, #tpu.memory_space<any>>
    %c15_i32_46 = arith.constant 15 : i32
    %c0_i32_47 = arith.constant 0 : i32
    %93 = tpu.memref_slice %arg7[%c15_i32_46, %c0_i32_47] : memref<16x128xf32, #tpu.memory_space<vmem>> -> memref<1x128xf32, #tpu.memory_space<vmem>>
    %94 = tpu.memref_slice %arg8[%c15_i32] : memref<16x!tpu.dma_semaphore, #tpu.memory_space<semaphore_mem>> -> memref<1x!tpu.dma_semaphore, #tpu.memory_space<semaphore_mem>>
    %95 = tpu.memref_squeeze %94 : memref<1x!tpu.dma_semaphore, #tpu.memory_space<semaphore_mem>> -> memref<!tpu.dma_semaphore, #tpu.memory_space<semaphore_mem>>
    tpu.enqueue_dma source(%92 : memref<1x128xf32, #tpu.memory_space<any>>) target(%93 : memref<1x128xf32, #tpu.memory_space<vmem>>) target_semaphore(%95 : memref<!tpu.dma_semaphore, #tpu.memory_space<semaphore_mem>>)
    %c0_i32_48 = arith.constant 0 : i32
    %c0_i32_49 = arith.constant 0 : i32
    %c0_i32_50 = arith.constant 0 : i32
    %96 = tpu.memref_slice %arg3[%c0_i32_49, %c0_i32_50] : memref<512x128xf32, #tpu.memory_space<any>> -> memref<1x128xf32, #tpu.memory_space<any>>
    %c0_i32_51 = arith.constant 0 : i32
    %c0_i32_52 = arith.constant 0 : i32
    %97 = tpu.memref_slice %arg7[%c0_i32_51, %c0_i32_52] : memref<16x128xf32, #tpu.memory_space<vmem>> -> memref<1x128xf32, #tpu.memory_space<vmem>>
    %98 = tpu.memref_slice %arg8[%c0_i32_48] : memref<16x!tpu.dma_semaphore, #tpu.memory_space<semaphore_mem>> -> memref<1x!tpu.dma_semaphore, #tpu.memory_space<semaphore_mem>>
    %99 = tpu.memref_squeeze %98 : memref<1x!tpu.dma_semaphore, #tpu.memory_space<semaphore_mem>> -> memref<!tpu.dma_semaphore, #tpu.memory_space<semaphore_mem>>
    tpu.wait_dma2 semaphore(%99 : memref<!tpu.dma_semaphore, #tpu.memory_space<semaphore_mem>>) src(%96 : memref<1x128xf32, #tpu.memory_space<any>>) dst(%97 : memref<1x128xf32, #tpu.memory_space<vmem>>)
    %c1_i32_53 = arith.constant 1 : i32
    %c0_i32_54 = arith.constant 0 : i32
    %c0_i32_55 = arith.constant 0 : i32
    %100 = tpu.memref_slice %arg3[%c0_i32_54, %c0_i32_55] : memref<512x128xf32, #tpu.memory_space<any>> -> memref<1x128xf32, #tpu.memory_space<any>>
    %c1_i32_56 = arith.constant 1 : i32
    %c0_i32_57 = arith.constant 0 : i32
    %101 = tpu.memref_slice %arg7[%c1_i32_56, %c0_i32_57] : memref<16x128xf32, #tpu.memory_space<vmem>> -> memref<1x128xf32, #tpu.memory_space<vmem>>
    %102 = tpu.memref_slice %arg8[%c1_i32_53] : memref<16x!tpu.dma_semaphore, #tpu.memory_space<semaphore_mem>> -> memref<1x!tpu.dma_semaphore, #tpu.memory_space<semaphore_mem>>
    %103 = tpu.memref_squeeze %102 : memref<1x!tpu.dma_semaphore, #tpu.memory_space<semaphore_mem>> -> memref<!tpu.dma_semaphore, #tpu.memory_space<semaphore_mem>>
    tpu.wait_dma2 semaphore(%103 : memref<!tpu.dma_semaphore, #tpu.memory_space<semaphore_mem>>) src(%100 : memref<1x128xf32, #tpu.memory_space<any>>) dst(%101 : memref<1x128xf32, #tpu.memory_space<vmem>>)
    %c2_i32_58 = arith.constant 2 : i32
    %c0_i32_59 = arith.constant 0 : i32
    %c0_i32_60 = arith.constant 0 : i32
    %104 = tpu.memref_slice %arg3[%c0_i32_59, %c0_i32_60] : memref<512x128xf32, #tpu.memory_space<any>> -> memref<1x128xf32, #tpu.memory_space<any>>
    %c2_i32_61 = arith.constant 2 : i32
    %c0_i32_62 = arith.constant 0 : i32
    %105 = tpu.memref_slice %arg7[%c2_i32_61, %c0_i32_62] : memref<16x128xf32, #tpu.memory_space<vmem>> -> memref<1x128xf32, #tpu.memory_space<vmem>>
    %106 = tpu.memref_slice %arg8[%c2_i32_58] : memref<16x!tpu.dma_semaphore, #tpu.memory_space<semaphore_mem>> -> memref<1x!tpu.dma_semaphore, #tpu.memory_space<semaphore_mem>>
    %107 = tpu.memref_squeeze %106 : memref<1x!tpu.dma_semaphore, #tpu.memory_space<semaphore_mem>> -> memref<!tpu.dma_semaphore, #tpu.memory_space<semaphore_mem>>
    tpu.wait_dma2 semaphore(%107 : memref<!tpu.dma_semaphore, #tpu.memory_space<semaphore_mem>>) src(%104 : memref<1x128xf32, #tpu.memory_space<any>>) dst(%105 : memref<1x128xf32, #tpu.memory_space<vmem>>)
    %c3_i32_63 = arith.constant 3 : i32
    %c0_i32_64 = arith.constant 0 : i32
    %c0_i32_65 = arith.constant 0 : i32
    %108 = tpu.memref_slice %arg3[%c0_i32_64, %c0_i32_65] : memref<512x128xf32, #tpu.memory_space<any>> -> memref<1x128xf32, #tpu.memory_space<any>>
    %c3_i32_66 = arith.constant 3 : i32
    %c0_i32_67 = arith.constant 0 : i32
    %109 = tpu.memref_slice %arg7[%c3_i32_66, %c0_i32_67] : memref<16x128xf32, #tpu.memory_space<vmem>> -> memref<1x128xf32, #tpu.memory_space<vmem>>
    %110 = tpu.memref_slice %arg8[%c3_i32_63] : memref<16x!tpu.dma_semaphore, #tpu.memory_space<semaphore_mem>> -> memref<1x!tpu.dma_semaphore, #tpu.memory_space<semaphore_mem>>
    %111 = tpu.memref_squeeze %110 : memref<1x!tpu.dma_semaphore, #tpu.memory_space<semaphore_mem>> -> memref<!tpu.dma_semaphore, #tpu.memory_space<semaphore_mem>>
    tpu.wait_dma2 semaphore(%111 : memref<!tpu.dma_semaphore, #tpu.memory_space<semaphore_mem>>) src(%108 : memref<1x128xf32, #tpu.memory_space<any>>) dst(%109 : memref<1x128xf32, #tpu.memory_space<vmem>>)
    %c4_i32_68 = arith.constant 4 : i32
    %c0_i32_69 = arith.constant 0 : i32
    %c0_i32_70 = arith.constant 0 : i32
    %112 = tpu.memref_slice %arg3[%c0_i32_69, %c0_i32_70] : memref<512x128xf32, #tpu.memory_space<any>> -> memref<1x128xf32, #tpu.memory_space<any>>
    %c4_i32_71 = arith.constant 4 : i32
    %c0_i32_72 = arith.constant 0 : i32
    %113 = tpu.memref_slice %arg7[%c4_i32_71, %c0_i32_72] : memref<16x128xf32, #tpu.memory_space<vmem>> -> memref<1x128xf32, #tpu.memory_space<vmem>>
    %114 = tpu.memref_slice %arg8[%c4_i32_68] : memref<16x!tpu.dma_semaphore, #tpu.memory_space<semaphore_mem>> -> memref<1x!tpu.dma_semaphore, #tpu.memory_space<semaphore_mem>>
    %115 = tpu.memref_squeeze %114 : memref<1x!tpu.dma_semaphore, #tpu.memory_space<semaphore_mem>> -> memref<!tpu.dma_semaphore, #tpu.memory_space<semaphore_mem>>
    tpu.wait_dma2 semaphore(%115 : memref<!tpu.dma_semaphore, #tpu.memory_space<semaphore_mem>>) src(%112 : memref<1x128xf32, #tpu.memory_space<any>>) dst(%113 : memref<1x128xf32, #tpu.memory_space<vmem>>)
    %c5_i32_73 = arith.constant 5 : i32
    %c0_i32_74 = arith.constant 0 : i32
    %c0_i32_75 = arith.constant 0 : i32
    %116 = tpu.memref_slice %arg3[%c0_i32_74, %c0_i32_75] : memref<512x128xf32, #tpu.memory_space<any>> -> memref<1x128xf32, #tpu.memory_space<any>>
    %c5_i32_76 = arith.constant 5 : i32
    %c0_i32_77 = arith.constant 0 : i32
    %117 = tpu.memref_slice %arg7[%c5_i32_76, %c0_i32_77] : memref<16x128xf32, #tpu.memory_space<vmem>> -> memref<1x128xf32, #tpu.memory_space<vmem>>
    %118 = tpu.memref_slice %arg8[%c5_i32_73] : memref<16x!tpu.dma_semaphore, #tpu.memory_space<semaphore_mem>> -> memref<1x!tpu.dma_semaphore, #tpu.memory_space<semaphore_mem>>
    %119 = tpu.memref_squeeze %118 : memref<1x!tpu.dma_semaphore, #tpu.memory_space<semaphore_mem>> -> memref<!tpu.dma_semaphore, #tpu.memory_space<semaphore_mem>>
    tpu.wait_dma2 semaphore(%119 : memref<!tpu.dma_semaphore, #tpu.memory_space<semaphore_mem>>) src(%116 : memref<1x128xf32, #tpu.memory_space<any>>) dst(%117 : memref<1x128xf32, #tpu.memory_space<vmem>>)
    %c6_i32_78 = arith.constant 6 : i32
    %c0_i32_79 = arith.constant 0 : i32
    %c0_i32_80 = arith.constant 0 : i32
    %120 = tpu.memref_slice %arg3[%c0_i32_79, %c0_i32_80] : memref<512x128xf32, #tpu.memory_space<any>> -> memref<1x128xf32, #tpu.memory_space<any>>
    %c6_i32_81 = arith.constant 6 : i32
    %c0_i32_82 = arith.constant 0 : i32
    %121 = tpu.memref_slice %arg7[%c6_i32_81, %c0_i32_82] : memref<16x128xf32, #tpu.memory_space<vmem>> -> memref<1x128xf32, #tpu.memory_space<vmem>>
    %122 = tpu.memref_slice %arg8[%c6_i32_78] : memref<16x!tpu.dma_semaphore, #tpu.memory_space<semaphore_mem>> -> memref<1x!tpu.dma_semaphore, #tpu.memory_space<semaphore_mem>>
    %123 = tpu.memref_squeeze %122 : memref<1x!tpu.dma_semaphore, #tpu.memory_space<semaphore_mem>> -> memref<!tpu.dma_semaphore, #tpu.memory_space<semaphore_mem>>
    tpu.wait_dma2 semaphore(%123 : memref<!tpu.dma_semaphore, #tpu.memory_space<semaphore_mem>>) src(%120 : memref<1x128xf32, #tpu.memory_space<any>>) dst(%121 : memref<1x128xf32, #tpu.memory_space<vmem>>)
    %c7_i32_83 = arith.constant 7 : i32
    %c0_i32_84 = arith.constant 0 : i32
    %c0_i32_85 = arith.constant 0 : i32
    %124 = tpu.memref_slice %arg3[%c0_i32_84, %c0_i32_85] : memref<512x128xf32, #tpu.memory_space<any>> -> memref<1x128xf32, #tpu.memory_space<any>>
    %c7_i32_86 = arith.constant 7 : i32
    %c0_i32_87 = arith.constant 0 : i32
    %125 = tpu.memref_slice %arg7[%c7_i32_86, %c0_i32_87] : memref<16x128xf32, #tpu.memory_space<vmem>> -> memref<1x128xf32, #tpu.memory_space<vmem>>
    %126 = tpu.memref_slice %arg8[%c7_i32_83] : memref<16x!tpu.dma_semaphore, #tpu.memory_space<semaphore_mem>> -> memref<1x!tpu.dma_semaphore, #tpu.memory_space<semaphore_mem>>
    %127 = tpu.memref_squeeze %126 : memref<1x!tpu.dma_semaphore, #tpu.memory_space<semaphore_mem>> -> memref<!tpu.dma_semaphore, #tpu.memory_space<semaphore_mem>>
    tpu.wait_dma2 semaphore(%127 : memref<!tpu.dma_semaphore, #tpu.memory_space<semaphore_mem>>) src(%124 : memref<1x128xf32, #tpu.memory_space<any>>) dst(%125 : memref<1x128xf32, #tpu.memory_space<vmem>>)
    %c8_i32_88 = arith.constant 8 : i32
    %c0_i32_89 = arith.constant 0 : i32
    %c0_i32_90 = arith.constant 0 : i32
    %128 = tpu.memref_slice %arg3[%c0_i32_89, %c0_i32_90] : memref<512x128xf32, #tpu.memory_space<any>> -> memref<1x128xf32, #tpu.memory_space<any>>
    %c8_i32_91 = arith.constant 8 : i32
    %c0_i32_92 = arith.constant 0 : i32
    %129 = tpu.memref_slice %arg7[%c8_i32_91, %c0_i32_92] : memref<16x128xf32, #tpu.memory_space<vmem>> -> memref<1x128xf32, #tpu.memory_space<vmem>>
    %130 = tpu.memref_slice %arg8[%c8_i32_88] : memref<16x!tpu.dma_semaphore, #tpu.memory_space<semaphore_mem>> -> memref<1x!tpu.dma_semaphore, #tpu.memory_space<semaphore_mem>>
    %131 = tpu.memref_squeeze %130 : memref<1x!tpu.dma_semaphore, #tpu.memory_space<semaphore_mem>> -> memref<!tpu.dma_semaphore, #tpu.memory_space<semaphore_mem>>
    tpu.wait_dma2 semaphore(%131 : memref<!tpu.dma_semaphore, #tpu.memory_space<semaphore_mem>>) src(%128 : memref<1x128xf32, #tpu.memory_space<any>>) dst(%129 : memref<1x128xf32, #tpu.memory_space<vmem>>)
    %c9_i32_93 = arith.constant 9 : i32
    %c0_i32_94 = arith.constant 0 : i32
    %c0_i32_95 = arith.constant 0 : i32
    %132 = tpu.memref_slice %arg3[%c0_i32_94, %c0_i32_95] : memref<512x128xf32, #tpu.memory_space<any>> -> memref<1x128xf32, #tpu.memory_space<any>>
    %c9_i32_96 = arith.constant 9 : i32
    %c0_i32_97 = arith.constant 0 : i32
    %133 = tpu.memref_slice %arg7[%c9_i32_96, %c0_i32_97] : memref<16x128xf32, #tpu.memory_space<vmem>> -> memref<1x128xf32, #tpu.memory_space<vmem>>
    %134 = tpu.memref_slice %arg8[%c9_i32_93] : memref<16x!tpu.dma_semaphore, #tpu.memory_space<semaphore_mem>> -> memref<1x!tpu.dma_semaphore, #tpu.memory_space<semaphore_mem>>
    %135 = tpu.memref_squeeze %134 : memref<1x!tpu.dma_semaphore, #tpu.memory_space<semaphore_mem>> -> memref<!tpu.dma_semaphore, #tpu.memory_space<semaphore_mem>>
    tpu.wait_dma2 semaphore(%135 : memref<!tpu.dma_semaphore, #tpu.memory_space<semaphore_mem>>) src(%132 : memref<1x128xf32, #tpu.memory_space<any>>) dst(%133 : memref<1x128xf32, #tpu.memory_space<vmem>>)
    %c10_i32_98 = arith.constant 10 : i32
    %c0_i32_99 = arith.constant 0 : i32
    %c0_i32_100 = arith.constant 0 : i32
    %136 = tpu.memref_slice %arg3[%c0_i32_99, %c0_i32_100] : memref<512x128xf32, #tpu.memory_space<any>> -> memref<1x128xf32, #tpu.memory_space<any>>
    %c10_i32_101 = arith.constant 10 : i32
    %c0_i32_102 = arith.constant 0 : i32
    %137 = tpu.memref_slice %arg7[%c10_i32_101, %c0_i32_102] : memref<16x128xf32, #tpu.memory_space<vmem>> -> memref<1x128xf32, #tpu.memory_space<vmem>>
    %138 = tpu.memref_slice %arg8[%c10_i32_98] : memref<16x!tpu.dma_semaphore, #tpu.memory_space<semaphore_mem>> -> memref<1x!tpu.dma_semaphore, #tpu.memory_space<semaphore_mem>>
    %139 = tpu.memref_squeeze %138 : memref<1x!tpu.dma_semaphore, #tpu.memory_space<semaphore_mem>> -> memref<!tpu.dma_semaphore, #tpu.memory_space<semaphore_mem>>
    tpu.wait_dma2 semaphore(%139 : memref<!tpu.dma_semaphore, #tpu.memory_space<semaphore_mem>>) src(%136 : memref<1x128xf32, #tpu.memory_space<any>>) dst(%137 : memref<1x128xf32, #tpu.memory_space<vmem>>)
    %c11_i32_103 = arith.constant 11 : i32
    %c0_i32_104 = arith.constant 0 : i32
    %c0_i32_105 = arith.constant 0 : i32
    %140 = tpu.memref_slice %arg3[%c0_i32_104, %c0_i32_105] : memref<512x128xf32, #tpu.memory_space<any>> -> memref<1x128xf32, #tpu.memory_space<any>>
    %c11_i32_106 = arith.constant 11 : i32
    %c0_i32_107 = arith.constant 0 : i32
    %141 = tpu.memref_slice %arg7[%c11_i32_106, %c0_i32_107] : memref<16x128xf32, #tpu.memory_space<vmem>> -> memref<1x128xf32, #tpu.memory_space<vmem>>
    %142 = tpu.memref_slice %arg8[%c11_i32_103] : memref<16x!tpu.dma_semaphore, #tpu.memory_space<semaphore_mem>> -> memref<1x!tpu.dma_semaphore, #tpu.memory_space<semaphore_mem>>
    %143 = tpu.memref_squeeze %142 : memref<1x!tpu.dma_semaphore, #tpu.memory_space<semaphore_mem>> -> memref<!tpu.dma_semaphore, #tpu.memory_space<semaphore_mem>>
    tpu.wait_dma2 semaphore(%143 : memref<!tpu.dma_semaphore, #tpu.memory_space<semaphore_mem>>) src(%140 : memref<1x128xf32, #tpu.memory_space<any>>) dst(%141 : memref<1x128xf32, #tpu.memory_space<vmem>>)
    %c12_i32_108 = arith.constant 12 : i32
    %c0_i32_109 = arith.constant 0 : i32
    %c0_i32_110 = arith.constant 0 : i32
    %144 = tpu.memref_slice %arg3[%c0_i32_109, %c0_i32_110] : memref<512x128xf32, #tpu.memory_space<any>> -> memref<1x128xf32, #tpu.memory_space<any>>
    %c12_i32_111 = arith.constant 12 : i32
    %c0_i32_112 = arith.constant 0 : i32
    %145 = tpu.memref_slice %arg7[%c12_i32_111, %c0_i32_112] : memref<16x128xf32, #tpu.memory_space<vmem>> -> memref<1x128xf32, #tpu.memory_space<vmem>>
    %146 = tpu.memref_slice %arg8[%c12_i32_108] : memref<16x!tpu.dma_semaphore, #tpu.memory_space<semaphore_mem>> -> memref<1x!tpu.dma_semaphore, #tpu.memory_space<semaphore_mem>>
    %147 = tpu.memref_squeeze %146 : memref<1x!tpu.dma_semaphore, #tpu.memory_space<semaphore_mem>> -> memref<!tpu.dma_semaphore, #tpu.memory_space<semaphore_mem>>
    tpu.wait_dma2 semaphore(%147 : memref<!tpu.dma_semaphore, #tpu.memory_space<semaphore_mem>>) src(%144 : memref<1x128xf32, #tpu.memory_space<any>>) dst(%145 : memref<1x128xf32, #tpu.memory_space<vmem>>)
    %c13_i32_113 = arith.constant 13 : i32
    %c0_i32_114 = arith.constant 0 : i32
    %c0_i32_115 = arith.constant 0 : i32
    %148 = tpu.memref_slice %arg3[%c0_i32_114, %c0_i32_115] : memref<512x128xf32, #tpu.memory_space<any>> -> memref<1x128xf32, #tpu.memory_space<any>>
    %c13_i32_116 = arith.constant 13 : i32
    %c0_i32_117 = arith.constant 0 : i32
    %149 = tpu.memref_slice %arg7[%c13_i32_116, %c0_i32_117] : memref<16x128xf32, #tpu.memory_space<vmem>> -> memref<1x128xf32, #tpu.memory_space<vmem>>
    %150 = tpu.memref_slice %arg8[%c13_i32_113] : memref<16x!tpu.dma_semaphore, #tpu.memory_space<semaphore_mem>> -> memref<1x!tpu.dma_semaphore, #tpu.memory_space<semaphore_mem>>
    %151 = tpu.memref_squeeze %150 : memref<1x!tpu.dma_semaphore, #tpu.memory_space<semaphore_mem>> -> memref<!tpu.dma_semaphore, #tpu.memory_space<semaphore_mem>>
    tpu.wait_dma2 semaphore(%151 : memref<!tpu.dma_semaphore, #tpu.memory_space<semaphore_mem>>) src(%148 : memref<1x128xf32, #tpu.memory_space<any>>) dst(%149 : memref<1x128xf32, #tpu.memory_space<vmem>>)
    %c14_i32_118 = arith.constant 14 : i32
    %c0_i32_119 = arith.constant 0 : i32
    %c0_i32_120 = arith.constant 0 : i32
    %152 = tpu.memref_slice %arg3[%c0_i32_119, %c0_i32_120] : memref<512x128xf32, #tpu.memory_space<any>> -> memref<1x128xf32, #tpu.memory_space<any>>
    %c14_i32_121 = arith.constant 14 : i32
    %c0_i32_122 = arith.constant 0 : i32
    %153 = tpu.memref_slice %arg7[%c14_i32_121, %c0_i32_122] : memref<16x128xf32, #tpu.memory_space<vmem>> -> memref<1x128xf32, #tpu.memory_space<vmem>>
    %154 = tpu.memref_slice %arg8[%c14_i32_118] : memref<16x!tpu.dma_semaphore, #tpu.memory_space<semaphore_mem>> -> memref<1x!tpu.dma_semaphore, #tpu.memory_space<semaphore_mem>>
    %155 = tpu.memref_squeeze %154 : memref<1x!tpu.dma_semaphore, #tpu.memory_space<semaphore_mem>> -> memref<!tpu.dma_semaphore, #tpu.memory_space<semaphore_mem>>
    tpu.wait_dma2 semaphore(%155 : memref<!tpu.dma_semaphore, #tpu.memory_space<semaphore_mem>>) src(%152 : memref<1x128xf32, #tpu.memory_space<any>>) dst(%153 : memref<1x128xf32, #tpu.memory_space<vmem>>)
    %c15_i32_123 = arith.constant 15 : i32
    %c0_i32_124 = arith.constant 0 : i32
    %c0_i32_125 = arith.constant 0 : i32
    %156 = tpu.memref_slice %arg3[%c0_i32_124, %c0_i32_125] : memref<512x128xf32, #tpu.memory_space<any>> -> memref<1x128xf32, #tpu.memory_space<any>>
    %c15_i32_126 = arith.constant 15 : i32
    %c0_i32_127 = arith.constant 0 : i32
    %157 = tpu.memref_slice %arg7[%c15_i32_126, %c0_i32_127] : memref<16x128xf32, #tpu.memory_space<vmem>> -> memref<1x128xf32, #tpu.memory_space<vmem>>
    %158 = tpu.memref_slice %arg8[%c15_i32_123] : memref<16x!tpu.dma_semaphore, #tpu.memory_space<semaphore_mem>> -> memref<1x!tpu.dma_semaphore, #tpu.memory_space<semaphore_mem>>
    %159 = tpu.memref_squeeze %158 : memref<1x!tpu.dma_semaphore, #tpu.memory_space<semaphore_mem>> -> memref<!tpu.dma_semaphore, #tpu.memory_space<semaphore_mem>>
    tpu.wait_dma2 semaphore(%159 : memref<!tpu.dma_semaphore, #tpu.memory_space<semaphore_mem>>) src(%156 : memref<1x128xf32, #tpu.memory_space<any>>) dst(%157 : memref<1x128xf32, #tpu.memory_space<vmem>>)
    %160 = arith.index_cast %arg0 : i32 to index
    %c0_128 = arith.constant 0 : index
    %161 = vector.load %arg2[%160, %c0_128] : memref<8x16xf32, #tpu.memory_space<vmem>>, vector<1x16xf32>
    %c0_129 = arith.constant 0 : index
    %c0_130 = arith.constant 0 : index
    %162 = vector.load %arg7[%c0_129, %c0_130] : memref<16x128xf32, #tpu.memory_space<vmem>>, vector<16x128xf32>
    %cst = arith.constant dense<0.000000e+00> : vector<1x128xf32>
    %163 = tpu.matmul %161, %162, %cst {dimension_numbers = #tpu.dot_dimension_numbers<[1], [0], [0], [1], [0, 0, 1, 1], [], []>} : vector<1x16xf32>, vector<16x128xf32>, vector<1x128xf32> -> vector<1x128xf32>
    %164 = arith.truncf %163 : vector<1x128xf32> to vector<1x128xbf16>
    %c0_131 = arith.constant 0 : index
    %c0_132 = arith.constant 0 : index
    %165 = vector.load %arg4[%c0_131, %c0_132] : memref<128x128xbf16, #tpu.memory_space<vmem>>, vector<128x128xbf16>
    %cst_133 = arith.constant dense<0.000000e+00> : vector<1x128xf32>
    %166 = tpu.matmul %164, %165, %cst_133 {dimension_numbers = #tpu.dot_dimension_numbers<[1], [0], [0], [1], [0, 0, 1, 1], [], []>} : vector<1x128xbf16>, vector<128x128xbf16>, vector<1x128xf32> -> vector<1x128xf32>
    %c0_134 = arith.constant 0 : index
    %c0_135 = arith.constant 0 : index
    %167 = vector.load %arg5[%c0_134, %c0_135] : memref<1x128xf32, #tpu.memory_space<vmem>>, vector<1x128xf32>
    %168 = arith.addf %166, %167 : vector<1x128xf32>
    %cst_136 = arith.constant 0.000000e+00 : f32
    %169 = vector.broadcast %cst_136 : f32 to vector<1x128xf32>
    %170 = arith.maximumf %168, %169 : vector<1x128xf32>
    %171 = arith.addf %170, %163 : vector<1x128xf32>
    %172 = arith.index_cast %arg0 : i32 to index
    %c0_137 = arith.constant 0 : index
    %173 = vector.load %arg9[%172, %c0_137] : memref<8x128xf32, #tpu.memory_space<vmem>>, vector<1x128xf32>
    tpu.vector_store %arg9[%172, %c0_137], %171 {strides = array<i32>} : memref<8x128xf32, #tpu.memory_space<vmem>>, vector<1x128xf32>,
    %c7_i32_138 = arith.constant 7 : i32
    %174 = arith.cmpi eq, %arg0, %c7_i32_138 : i32
    %175 = arith.extui %174 : i1 to i32
    %c0_i32_139 = arith.constant 0 : i32
    %176 = arith.cmpi ne, %175, %c0_i32_139 : i32
    scf.if %176 {
      %c0_140 = arith.constant 0 : index
      %c0_141 = arith.constant 0 : index
      %177 = vector.load %arg9[%c0_140, %c0_141] : memref<8x128xf32, #tpu.memory_space<vmem>>, vector<8x128xf32>
      %178 = arith.truncf %177 : vector<8x128xf32> to vector<8x128xbf16>
      %c0_142 = arith.constant 0 : index
      %c0_143 = arith.constant 0 : index
      %179 = vector.load %arg6[%c0_142, %c0_143] : memref<8x128xbf16, #tpu.memory_space<vmem>>, vector<8x128xbf16>
      tpu.vector_store %arg6[%c0_142, %c0_143], %178 {strides = array<i32>} : memref<8x128xbf16, #tpu.memory_space<vmem>>, vector<8x128xbf16>,
    } else {
    }
    return
  }
  func.func @transform_0(%arg0: i32, %arg1: memref<8x16xi32, #tpu.memory_space<smem>>) -> (i32, i32) {
    %c0_i32 = arith.constant 0 : i32
    %c0_i32_0 = arith.constant 0 : i32
    %c0_i32_1 = arith.constant 0 : i32
    return %c0_i32, %c0_i32_0 : i32, i32
  }
  func.func @transform_2(%arg0: i32, %arg1: memref<8x16xi32, #tpu.memory_space<smem>>) -> (i32, i32) {
    %c0_i32 = arith.constant 0 : i32
    %c0_i32_0 = arith.constant 0 : i32
    %c0_i32_1 = arith.constant 0 : i32
    return %c0_i32, %c0_i32_0 : i32, i32
  }
  func.func @transform_3(%arg0: i32, %arg1: memref<8x16xi32, #tpu.memory_space<smem>>) -> (i32, i32) {
    %c0_i32 = arith.constant 0 : i32
    %c0_i32_0 = arith.constant 0 : i32
    %c0_i32_1 = arith.constant 0 : i32
    return %c0_i32, %c0_i32_0 : i32, i32
  }
  func.func @transform_4(%arg0: i32, %arg1: memref<8x16xi32, #tpu.memory_space<smem>>) -> (i32, i32) {
    %c0_i32 = arith.constant 0 : i32
    %c0_i32_0 = arith.constant 0 : i32
    %c0_i32_1 = arith.constant 0 : i32
    return %c0_i32, %c0_i32_0 : i32, i32
  }
}

</mosaic_0001>

<bundles_post_ra>
// kernel: tpu_custom_call.1
= control target key start
LH: loop header
LB: loop body
LE: loop exit
PB: predicated region body
PF: predicated region fallthrough
CT: control target
= control target key end

     0   :  { %s1527_s18 = smov [#allocation6]   ;;  %s1905_s0 = inlined_call_operand.hbm [shape: s32[8,16], index: 0, kind: input, shape index: {}]   ;;  %s1906_s1 = inlined_call_operand.hbm [shape: f32[8,16], index: 1, kind: input, shape index: {}]   ;;  %s1907_s2 = inlined_call_operand.hbm [shape: f32[512,128], index: 2, kind: input, shape index: {}]   ;;  %s1908_s3 = inlined_call_operand.hbm [shape: bf16[128,128], index: 3, kind: input, shape index: {}]   ;;  %s1909_s4 = inlined_call_operand.vmem [shape: f32[1,128], index: 4, kind: input, shape index: {}]   ;;  %s1910_s5 = inlined_call_operand.hbm [shape: bf16[8,128], index: 5, kind: output, shape index: {}]  }
   0x1   :  { %11 = dma.hbm_to_smem %s1905_s0, 128, %s1527_s18, [#allocation5] }
   0x2   :  { %1477 = dma.done.wait [#allocation5], 128 }
   0x3   :  { %1478 = vsyncadd [#allocation5], 4294967168 }
   0x4   :  { %13 = sfence }
   0x5   :  { %14 = vsyncpa [#allocation8], 0 }
   0x6   :  { %15 = vsyncpa [#allocation11], 0 }
   0x7   :  { %16 = vsyncpa [#allocation9], 0  ;;  %s1584_s21 = smov 0  }
   0x8 LB: > { %s1590_s22 = sadd.s32 4294967295, %s1525_s21   ;;  %p872_p0 = scmp.ge.s32.totalorder %s1525_s21, 1  ;;  %s1525_s21 = sphi %s1584_s21, %s22_s21  }
   0x9   : > { %p111_p1 = scmp.lt.s32.totalorder %s1525_s21, 9  ;;  %p1911_p2 = scmp.eq.s32.totalorder %s1590_s22, 0 }
   0xa   : > { %s1528_s0 = smov [#allocation7]   ;;  %s1529_s25 = smov [#allocation10]  }
   0xb   : > { %s124_s23 = sshll.u32 %s1528_s0, 4  ;;  %p1595_p3 = pnand %p872_p0, %p111_p1  ;;  %s125_s23 = int_to_ptr.vmem [resolvable:$true] %s124_s23 }
   0xc   : > { %s134_s26 = sshll.u32 %s1529_s25, 4  ;;  %s1056_s28 = scalar_lea.vmem %s125_s23, 128  ;;  %s135_s26 = int_to_ptr.vmem [resolvable:$true] %s134_s26 }
   0xd   : > { %s1913_s24 = scalar_select %p1595_p3, 1, 0 }
   0xe   : > { %p984_p4 = pneg %p1595_p3  ;;  %p1057_p7 = scmp.ne.s32.totalorder %s125_s23, %s1056_s28 }
   0xf   : > { %p1064_p10 = scmp.lt.s32.totalorder %s125_s23, %s125_s23  ;;  %p1065_p11 = scmp.lt.s32.totalorder %s1056_s28, %s1056_s28 }
  0x10   : > { %p1603_p5 = pnand %p1911_p2, %p984_p4 }
  0x11   : > { %p1066_p12 = por %p1065_p11, %p1064_p10 }
  0x12   : > { %p1047_p6 = pneg %p1603_p5 }
  0x14   : > { %p1059_p8 = pnand %p1057_p7, %p1047_p6 }
  0x16   : > { %p1060_p9 = pneg %p1059_p8 }
  0x18   : > { %p1067_p13 = pnand %p1066_p12, %p1060_p9 }
  0x1a   : > { %1070 = shalt.err (!%p1067_p13)
}
  0x1b   : > { %987 = dma.hbm_to_vmem [thread:$0]  (!%p1603_p5), %s1906_s1, 128, %s125_s23, [#allocation8]  }
  0x1c   : > { %s1082_s6 = scalar_lea.vmem %s135_s26, 1024  ;;  %p1090_p7 = scmp.lt.s32.totalorder %s135_s26, %s135_s26 }
  0x1d   : > { %p1083_p0 = scmp.ne.s32.totalorder %s135_s26, %s1082_s6  ;;  %p1091_p8 = scmp.lt.s32.totalorder %s1082_s6, %s1082_s6 }
  0x1f   : > { %p1085_p1 = pnand %p1083_p0, %p1047_p6  ;;  %p1092_p2 = por %p1091_p8, %p1090_p7 }
  0x21   : > { %p1086_p4 = pneg %p1085_p1 }
  0x23   : > { %p1093_p3 = pnand %p1092_p2, %p1086_p4 }
  0x25   : > { %1096 = shalt.err (!%p1093_p3)
}
  0x26   : > { %s1530_s7 = smov 64   ;;  %s1531_s8 = smov 4  }
  0x27   : > { %990 = dma.hbm_to_vmem [thread:$0]  (!%p1603_p5), %s1908_s3, 1024, %s135_s26, [#allocation11], %s1530_s7, %s1530_s7, %s1531_s8  }
  0x28   : > { %p1915_p9 = scmp.ne.s32.totalorder %s1913_s24, 0 }
  0x29   : > { %p1916_p10 = scmp.eq.s32.totalorder (!%p1915_p9), %s1590_s22, 0 }
  0x2a   : > { %153 = sbr.rel (%p1915_p9) target bundleno = 837 (0x345), region = 32 }
  0x2f   : > { %1480 = dma.done.wait (%p1916_p10), [#allocation8], 128   ;;  %p1917_p6 = pmov %p1916_p10 }
  0x31   : > { %1482 = vsyncadd (%p1917_p6), [#allocation8], 4294967168  ;;  %p1918_p2 = pmov %p1917_p6 }
  0x33   : > { %1484 = dma.done.wait (%p1918_p2), [#allocation11], 1024   ;;  %p1919_p3 = pmov %p1918_p2 }
  0x34   : > { %s1636_s11 = sshll.u32 %s1590_s22, 7  ;;  %s1532_s13 = smov [#allocation2]  }
  0x35   : > { %1486 = vsyncadd (%p1919_p3), [#allocation11], 4294966272  ;;  %s173_s12 = sld [smem:[#allocation6 + %s1636_s11]]  ;;  %s183_s14 = sshll.u32 %s1532_s13, 4  ;;  %s1639_s14 = int_to_ptr.vmem [resolvable:$true] %s183_s14 }
  0x36   : > { %s187_s15 = sadd.s32 1, %s1636_s11  ;;  %s1533_s17 = smov [#allocation2 + $0x1]  }
  0x37   : > { %s1642_s16 = sld [smem:[#allocation6 + %s187_s15]]  ;;  %s200_s18 = sshll.u32 %s1533_s17, 4  ;;  %s1645_s18 = int_to_ptr.vmem [resolvable:$true] %s200_s18 }
  0x38   : > { %s204_s19 = sadd.s32 2, %s1636_s11  ;;  %s221_s0 = sadd.s32 3, %s1636_s11 }
  0x39   : > { %s1647_s20 = sld [smem:[#allocation6 + %s204_s19]]  ;;  %s1534_s24 = smov [#allocation2 + $0x2]  }
  0x3a   : > { %s217_s25 = sshll.u32 %s1534_s24, 4  ;;  %s1658_s7 = scalar_lea.hbm %s1907_s2, 8192  ;;  %s1653_s25 = int_to_ptr.vmem [resolvable:$true] %s217_s25 }
  0x3b   : > { %s879_s23 = sshll.u32 %s173_s12, 4 }
  0x3c   : > { %s175_s28 = scalar_lea.hbm %s1907_s2, %s879_s23 }
  0x3d   : > { %s1097_s29 = scalar_lea.hbm %s175_s28, 16  ;;  %p1100_p11 = scmp.lt.s32.totalorder %s175_s28, %s1907_s2 }
  0x3e   : > { %p1098_p5 = scmp.ne.s32.totalorder %s175_s28, %s1097_s29  ;;  %p1101_p12 = scmp.lt.s32.totalorder %s1658_s7, %s1097_s29 }
  0x40   : > { %p1102_p13 = por %p1101_p12, %p1100_p11 }
  0x42   : > { %p1103_p0 = pnand %p1102_p13, %p1098_p5 }
  0x44   : > { %1106 = shalt.err (!%p1103_p0)  }
  0x45   : > { %s1107_s10 = scalar_lea.vmem %s1639_s14, 16  ;;  %s1667_s12 = scalar_lea.vmem %s1639_s14, 256 }
  0x46   : > { %p1108_p1 = scmp.ne.s32.totalorder %s1639_s14, %s1107_s10  ;;  %p1112_p4 = scmp.lt.s32.totalorder %s1639_s14, %s1639_s14 }
  0x47   : > { %p1113_p7 = scmp.lt.s32.totalorder %s1667_s12, %s1107_s10 }
  0x49   : > { %p1114_p8 = por %p1113_p7, %p1112_p4 }
  0x4b   : > { %p1115_p9 = pnand %p1114_p8, %p1108_p1 }
  0x4d   : > { %1118 = shalt.err (!%p1115_p9)  }
  0x4e   : > { %186 = dma.hbm_to_vmem [thread:$0]  %s175_s28, 16, %s1639_s14, [#allocation3] }
  0x4f   : > { %s880_s13 = sshll.u32 %s1642_s16, 4  ;;  %s1674_s15 = sld [smem:[#allocation6 + %s221_s0]] }
  0x50   : > { %s190_s23 = scalar_lea.hbm %s1907_s2, %s880_s13  ;;  %s881_s24 = sshll.u32 %s1647_s20, 4 }
  0x51   : > { %s1119_s26 = scalar_lea.hbm %s190_s23, 16  ;;  %p1122_p6 = scmp.lt.s32.totalorder %s190_s23, %s1907_s2 }
  0x52   : > { %p1120_p10 = scmp.ne.s32.totalorder %s190_s23, %s1119_s26  ;;  %p1123_p2 = scmp.lt.s32.totalorder %s1658_s7, %s1119_s26 }
  0x54   : > { %p1124_p3 = por %p1123_p2, %p1122_p6 }
  0x56   : > { %p1125_p5 = pnand %p1124_p3, %p1120_p10 }
  0x58   : > { %1128 = shalt.err (!%p1125_p5)  }
  0x59   : > { %s1129_s16 = scalar_lea.vmem %s1645_s18, 16  ;;  %p1134_p12 = scmp.lt.s32.totalorder %s1645_s18, %s1639_s14 }
  0x5a   : > { %p1130_p11 = scmp.ne.s32.totalorder %s1645_s18, %s1129_s16  ;;  %p1135_p13 = scmp.lt.s32.totalorder %s1667_s12, %s1129_s16 }
  0x5c   : > { %p1136_p0 = por %p1135_p13, %p1134_p12 }
  0x5e   : > { %p1137_p1 = pnand %p1136_p0, %p1130_p11 }
  0x60   : > { %1140 = shalt.err (!%p1137_p1)  }
  0x61   : > { %203 = dma.hbm_to_vmem [thread:$0]  %s190_s23, 16, %s1645_s18, [#allocation3 + $0x1] }
  0x62   : > { %s207_s28 = scalar_lea.hbm %s1907_s2, %s881_s24 }
  0x63   : > { %s1141_s30 = scalar_lea.hbm %s207_s28, 16  ;;  %p1144_p7 = scmp.lt.s32.totalorder %s207_s28, %s1907_s2 }
  0x64   : > { %p1142_p4 = scmp.ne.s32.totalorder %s207_s28, %s1141_s30  ;;  %p1145_p8 = scmp.lt.s32.totalorder %s1658_s7, %s1141_s30 }
  0x66   : > { %p1146_p9 = por %p1145_p8, %p1144_p7 }
  0x68   : > { %p1147_p10 = pnand %p1146_p9, %p1142_p4 }
  0x6a   : > { %1150 = shalt.err (!%p1147_p10)  }
  0x6b   : > { %s1151_s18 = scalar_lea.vmem %s1653_s25, 16  ;;  %p1156_p2 = scmp.lt.s32.totalorder %s1653_s25, %s1639_s14 }
  0x6c   : > { %p1152_p6 = scmp.ne.s32.totalorder %s1653_s25, %s1151_s18  ;;  %p1157_p3 = scmp.lt.s32.totalorder %s1667_s12, %s1151_s18 }
  0x6e   : > { %p1158_p5 = por %p1157_p3, %p1156_p2 }
  0x70   : > { %p1159_p11 = pnand %p1158_p5, %p1152_p6 }
  0x72   : > { %1162 = shalt.err (!%p1159_p11)  }
  0x73   : > { %220 = dma.hbm_to_vmem [thread:$0]  %s207_s28, 16, %s1653_s25, [#allocation3 + $0x2] }
  0x74   : > { %s1535_s9 = smov [#allocation2 + $0x3]   ;;  %s238_s13 = sadd.s32 4, %s1636_s11 }
  0x75   : > { %s234_s10 = sshll.u32 %s1535_s9, 4  ;;  %s882_s17 = sshll.u32 %s1674_s15, 4  ;;  %s235_s10 = int_to_ptr.vmem [resolvable:$true] %s234_s10 }
  0x76   : > { %s224_s24 = scalar_lea.hbm %s1907_s2, %s882_s17  ;;  %s239_s26 = sld [smem:[#allocation6 + %s238_s13]] }
  0x77   : > { %s1163_s27 = scalar_lea.hbm %s224_s24, 16  ;;  %p1166_p13 = scmp.lt.s32.totalorder %s224_s24, %s1907_s2 }
  0x78   : > { %p1164_p12 = scmp.ne.s32.totalorder %s224_s24, %s1163_s27  ;;  %p1167_p0 = scmp.lt.s32.totalorder %s1658_s7, %s1163_s27 }
  0x7a   : > { %p1168_p1 = por %p1167_p0, %p1166_p13 }
  0x7c   : > { %p1169_p4 = pnand %p1168_p1, %p1164_p12 }
  0x7e   : > { %1172 = shalt.err (!%p1169_p4)  }
  0x7f   : > { %s1173_s25 = scalar_lea.vmem %s235_s10, 16  ;;  %p1178_p8 = scmp.lt.s32.totalorder %s235_s10, %s1639_s14 }
  0x80   : > { %p1174_p7 = scmp.ne.s32.totalorder %s235_s10, %s1173_s25  ;;  %p1179_p9 = scmp.lt.s32.totalorder %s1667_s12, %s1173_s25 }
  0x82   : > { %p1180_p10 = por %p1179_p9, %p1178_p8 }
  0x84   : > { %p1181_p6 = pnand %p1180_p10, %p1174_p7 }
  0x86   : > { %1184 = shalt.err (!%p1181_p6)  }
  0x87   : > { %237 = dma.hbm_to_vmem [thread:$0]  %s224_s24, 16, %s235_s10, [#allocation3 + $0x3] }
  0x88   : > { %s255_s15 = sadd.s32 5, %s1636_s11  ;;  %s1536_s20 = smov [#allocation2 + $0x4]  }
  0x89   : > { %s251_s0 = sshll.u32 %s1536_s20, 4  ;;  %s256_s28 = sld [smem:[#allocation6 + %s255_s15]]  ;;  %s252_s0 = int_to_ptr.vmem [resolvable:$true] %s251_s0 }
  0x8a   : > { %s1537_s30 = smov [#allocation2 + $0x5]   ;;  %s272_s8 = sadd.s32 6, %s1636_s11 }
  0x8b   : > { %s268_s6 = sshll.u32 %s1537_s30, 4  ;;  %s883_s18 = sshll.u32 %s239_s26, 4  ;;  %s1716_s6 = int_to_ptr.vmem [resolvable:$true] %s268_s6 }
  0x8c   : > { %s241_s17 = scalar_lea.hbm %s1907_s2, %s883_s18  ;;  %s1721_s19 = sld [smem:[#allocation6 + %s272_s8]] }
  0x8d   : > { %s1185_s10 = scalar_lea.hbm %s241_s17, 16  ;;  %p1188_p3 = scmp.lt.s32.totalorder %s241_s17, %s1907_s2 }
  0x8e   : > { %p1186_p2 = scmp.ne.s32.totalorder %s241_s17, %s1185_s10  ;;  %p1189_p5 = scmp.lt.s32.totalorder %s1658_s7, %s1185_s10 }
  0x90   : > { %p1190_p11 = por %p1189_p5, %p1188_p3 }
  0x92   : > { %p1191_p12 = pnand %p1190_p11, %p1186_p2 }
  0x94   : > { %1194 = shalt.err (!%p1191_p12)  }
  0x95   : > { %s1195_s27 = scalar_lea.vmem %s252_s0, 16  ;;  %p1200_p0 = scmp.lt.s32.totalorder %s252_s0, %s1639_s14 }
  0x96   : > { %p1196_p13 = scmp.ne.s32.totalorder %s252_s0, %s1195_s27  ;;  %p1201_p1 = scmp.lt.s32.totalorder %s1667_s12, %s1195_s27 }
  0x98   : > { %p1202_p4 = por %p1201_p1, %p1200_p0 }
  0x9a   : > { %p1203_p7 = pnand %p1202_p4, %p1196_p13 }
  0x9c   : > { %1206 = shalt.err (!%p1203_p7)  }
  0x9d   : > { %254 = dma.hbm_to_vmem [thread:$0]  %s241_s17, 16, %s252_s0, [#allocation3 + $0x4] }
  0x9e   : > { %s884_s26 = sshll.u32 %s256_s28, 4  ;;  %s1538_s15 = smov [#allocation2 + $0x6]  }
  0x9f   : > { %s258_s25 = scalar_lea.hbm %s1907_s2, %s884_s26  ;;  %s285_s20 = sshll.u32 %s1538_s15, 4  ;;  %s286_s20 = int_to_ptr.vmem [resolvable:$true] %s285_s20 }
  0xa0   : > { %s1207_s30 = scalar_lea.hbm %s258_s25, 16  ;;  %p1210_p9 = scmp.lt.s32.totalorder %s258_s25, %s1907_s2 }
  0xa1   : > { %p1208_p8 = scmp.ne.s32.totalorder %s258_s25, %s1207_s30  ;;  %p1211_p10 = scmp.lt.s32.totalorder %s1658_s7, %s1207_s30 }
  0xa3   : > { %p1212_p6 = por %p1211_p10, %p1210_p9 }
  0xa5   : > { %p1213_p2 = pnand %p1212_p6, %p1208_p8 }
  0xa7   : > { %1216 = shalt.err (!%p1213_p2)  }
  0xa8   : > { %s1217_s0 = scalar_lea.vmem %s1716_s6, 16  ;;  %p1222_p5 = scmp.lt.s32.totalorder %s1716_s6, %s1639_s14 }
  0xa9   : > { %p1218_p3 = scmp.ne.s32.totalorder %s1716_s6, %s1217_s0  ;;  %p1223_p11 = scmp.lt.s32.totalorder %s1667_s12, %s1217_s0 }
  0xab   : > { %p1224_p12 = por %p1223_p11, %p1222_p5 }
  0xad   : > { %p1225_p13 = pnand %p1224_p12, %p1218_p3 }
  0xaf   : > { %1228 = shalt.err (!%p1225_p13)  }
  0xb0   : > { %271 = dma.hbm_to_vmem [thread:$0]  %s258_s25, 16, %s1716_s6, [#allocation3 + $0x5] }
  0xb1   : > { %s289_s28 = sadd.s32 7, %s1636_s11  ;;  %s885_s9 = sshll.u32 %s1721_s19, 4 }
  0xb2   : > { %s290_s13 = sld [smem:[#allocation6 + %s289_s28]]  ;;  %s275_s23 = scalar_lea.hbm %s1907_s2, %s885_s9 }
  0xb3   : > { %s1229_s24 = scalar_lea.hbm %s275_s23, 16  ;;  %p1232_p1 = scmp.lt.s32.totalorder %s275_s23, %s1907_s2 }
  0xb4   : > { %p1230_p0 = scmp.ne.s32.totalorder %s275_s23, %s1229_s24  ;;  %p1233_p4 = scmp.lt.s32.totalorder %s1658_s7, %s1229_s24 }
  0xb6   : > { %p1234_p7 = por %p1233_p4, %p1232_p1 }
  0xb8   : > { %p1235_p8 = pnand %p1234_p7, %p1230_p0 }
  0xba   : > { %1238 = shalt.err (!%p1235_p8)  }
  0xbb   : > { %s1239_s29 = scalar_lea.vmem %s286_s20, 16  ;;  %p1244_p10 = scmp.lt.s32.totalorder %s286_s20, %s1639_s14 }
  0xbc   : > { %p1240_p9 = scmp.ne.s32.totalorder %s286_s20, %s1239_s29  ;;  %p1245_p6 = scmp.lt.s32.totalorder %s1667_s12, %s1239_s29 }
  0xbe   : > { %p1246_p2 = por %p1245_p6, %p1244_p10 }
  0xc0   : > { %p1247_p3 = pnand %p1246_p2, %p1240_p9 }
  0xc2   : > { %1250 = shalt.err (!%p1247_p3)  }
  0xc3   : > { %288 = dma.hbm_to_vmem [thread:$0]  %s275_s23, 16, %s286_s20, [#allocation3 + $0x6] }
  0xc4   : > { %s1539_s6 = smov [#allocation2 + $0x7]   ;;  %s306_s16 = sadd.s32 8, %s1636_s11 }
  0xc5   : > { %s302_s19 = sshll.u32 %s1539_s6, 4  ;;  %s307_s25 = sld [smem:[#allocation6 + %s306_s16]]  ;;  %s303_s19 = int_to_ptr.vmem [resolvable:$true] %s302_s19 }
  0xc6   : > { %s323_s15 = sadd.s32 9, %s1636_s11  ;;  %s886_s30 = sshll.u32 %s290_s13, 4 }
  0xc7   : > { %s1540_s8 = smov [#allocation2 + $0x8]   ;;  %s292_s9 = scalar_lea.hbm %s1907_s2, %s886_s30 }
  0xc8   : > { %s319_s18 = sshll.u32 %s1540_s8, 4  ;;  %s1251_s17 = scalar_lea.hbm %s292_s9, 16  ;;  %s1758_s18 = int_to_ptr.vmem [resolvable:$true] %s319_s18 }
  0xc9   : > { %p1252_p5 = scmp.ne.s32.totalorder %s292_s9, %s1251_s17  ;;  %p1254_p11 = scmp.lt.s32.totalorder %s292_s9, %s1907_s2 }
  0xca   : > { %p1255_p12 = scmp.lt.s32.totalorder %s1658_s7, %s1251_s17 }
  0xcc   : > { %p1256_p13 = por %p1255_p12, %p1254_p11 }
  0xce   : > { %p1257_p0 = pnand %p1256_p13, %p1252_p5 }
  0xd0   : > { %1260 = shalt.err (!%p1257_p0)  }
  0xd1   : > { %s1261_s23 = scalar_lea.vmem %s303_s19, 16  ;;  %p1266_p4 = scmp.lt.s32.totalorder %s303_s19, %s1639_s14 }
  0xd2   : > { %p1262_p1 = scmp.ne.s32.totalorder %s303_s19, %s1261_s23  ;;  %p1267_p7 = scmp.lt.s32.totalorder %s1667_s12, %s1261_s23 }
  0xd4   : > { %p1268_p8 = por %p1267_p7, %p1266_p4 }
  0xd6   : > { %p1269_p9 = pnand %p1268_p8, %p1262_p1 }
  0xd8   : > { %1272 = shalt.err (!%p1269_p9)  }
  0xd9   : > { %305 = dma.hbm_to_vmem [thread:$0]  %s292_s9, 16, %s303_s19, [#allocation3 + $0x7] }
  0xda   : > { %s324_s13 = sld [smem:[#allocation6 + %s323_s15]]  ;;  %s887_s24 = sshll.u32 %s307_s25, 4 }
  0xdb   : > { %s1541_s27 = smov [#allocation2 + $0x9]   ;;  %s309_s16 = scalar_lea.hbm %s1907_s2, %s887_s24 }
  0xdc   : > { %s336_s26 = sshll.u32 %s1541_s27, 4  ;;  %s1273_s30 = scalar_lea.hbm %s309_s16, 16  ;;  %s1769_s26 = int_to_ptr.vmem [resolvable:$true] %s336_s26 }
  0xdd   : > { %p1274_p10 = scmp.ne.s32.totalorder %s309_s16, %s1273_s30  ;;  %p1276_p6 = scmp.lt.s32.totalorder %s309_s16, %s1907_s2 }
  0xde   : > { %p1277_p2 = scmp.lt.s32.totalorder %s1658_s7, %s1273_s30 }
  0xe0   : > { %p1278_p3 = por %p1277_p2, %p1276_p6 }
  0xe2   : > { %p1279_p5 = pnand %p1278_p3, %p1274_p10 }
  0xe4   : > { %1282 = shalt.err (!%p1279_p5)  }
  0xe5   : > { %s1283_s19 = scalar_lea.vmem %s1758_s18, 16  ;;  %p1288_p12 = scmp.lt.s32.totalorder %s1758_s18, %s1639_s14 }
  0xe6   : > { %p1284_p11 = scmp.ne.s32.totalorder %s1758_s18, %s1283_s19  ;;  %p1289_p13 = scmp.lt.s32.totalorder %s1667_s12, %s1283_s19 }
  0xe8   : > { %p1290_p0 = por %p1289_p13, %p1288_p12 }
  0xea   : > { %p1291_p1 = pnand %p1290_p0, %p1284_p11 }
  0xec   : > { %1294 = shalt.err (!%p1291_p1)  }
  0xed   : > { %322 = dma.hbm_to_vmem [thread:$0]  %s309_s16, 16, %s1758_s18, [#allocation3 + $0x8] }
  0xee   : > { %s340_s25 = sadd.s32 10, %s1636_s11  ;;  %s1542_s28 = smov [#allocation2 + $0xa]  }
  0xef   : > { %s1782_s15 = sld [smem:[#allocation6 + %s340_s25]]  ;;  %s353_s9 = sshll.u32 %s1542_s28, 4  ;;  %s1784_s9 = int_to_ptr.vmem [resolvable:$true] %s353_s9 }
  0xf0   : > { %s888_s17 = sshll.u32 %s324_s13, 4  ;;  %s357_s24 = sadd.s32 11, %s1636_s11 }
  0xf1   : > { %s326_s23 = scalar_lea.hbm %s1907_s2, %s888_s17 }
  0xf2   : > { %s1295_s27 = scalar_lea.hbm %s326_s23, 16  ;;  %p1298_p7 = scmp.lt.s32.totalorder %s326_s23, %s1907_s2 }
  0xf3   : > { %p1296_p4 = scmp.ne.s32.totalorder %s326_s23, %s1295_s27  ;;  %p1299_p8 = scmp.lt.s32.totalorder %s1658_s7, %s1295_s27 }
  0xf5   : > { %p1300_p9 = por %p1299_p8, %p1298_p7 }
  0xf7   : > { %p1301_p10 = pnand %p1300_p9, %p1296_p4 }
  0xf9   : > { %1304 = shalt.err (!%p1301_p10)  }
  0xfa   : > { %s1305_s18 = scalar_lea.vmem %s1769_s26, 16  ;;  %p1310_p2 = scmp.lt.s32.totalorder %s1769_s26, %s1639_s14 }
  0xfb   : > { %p1306_p6 = scmp.ne.s32.totalorder %s1769_s26, %s1305_s18  ;;  %p1311_p3 = scmp.lt.s32.totalorder %s1667_s12, %s1305_s18 }
  0xfd   : > { %p1312_p5 = por %p1311_p3, %p1310_p2 }
  0xff   : > { %p1313_p11 = pnand %p1312_p5, %p1306_p6 }
 0x101   : > { %1316 = shalt.err (!%p1313_p11)  }
 0x102   : > { %339 = dma.hbm_to_vmem [thread:$0]  %s326_s23, 16, %s1769_s26, [#allocation3 + $0x9] }
 0x103   : > { %s358_s13 = sld [smem:[#allocation6 + %s357_s24]]  ;;  %s1543_s16 = smov [#allocation2 + $0xb]  }
 0x104   : > { %s370_s30 = sshll.u32 %s1543_s16, 4  ;;  %s374_s8 = sadd.s32 12, %s1636_s11  ;;  %s1802_s30 = int_to_ptr.vmem [resolvable:$true] %s370_s30 }
 0x105   : > { %s889_s0 = sshll.u32 %s1782_s15, 4  ;;  %s1807_s17 = sld [smem:[#allocation6 + %s374_s8]] }
 0x106   : > { %s343_s28 = scalar_lea.hbm %s1907_s2, %s889_s0 }
 0x107   : > { %s1317_s20 = scalar_lea.hbm %s343_s28, 16  ;;  %p1320_p13 = scmp.lt.s32.totalorder %s343_s28, %s1907_s2 }
 0x108   : > { %p1318_p12 = scmp.ne.s32.totalorder %s343_s28, %s1317_s20  ;;  %p1321_p0 = scmp.lt.s32.totalorder %s1658_s7, %s1317_s20 }
 0x10a   : > { %p1322_p1 = por %p1321_p0, %p1320_p13 }
 0x10c   : > { %p1323_p4 = pnand %p1322_p1, %p1318_p12 }
 0x10e   : > { %1326 = shalt.err (!%p1323_p4)  }
 0x10f   : > { %s1327_s26 = scalar_lea.vmem %s1784_s9, 16  ;;  %p1332_p8 = scmp.lt.s32.totalorder %s1784_s9, %s1639_s14 }
 0x110   : > { %p1328_p7 = scmp.ne.s32.totalorder %s1784_s9, %s1327_s26  ;;  %p1333_p9 = scmp.lt.s32.totalorder %s1667_s12, %s1327_s26 }
 0x112   : > { %p1334_p10 = por %p1333_p9, %p1332_p8 }
 0x114   : > { %p1335_p6 = pnand %p1334_p10, %p1328_p7 }
 0x116   : > { %1338 = shalt.err (!%p1335_p6)  }
 0x117   : > { %356 = dma.hbm_to_vmem [thread:$0]  %s343_s28, 16, %s1784_s9, [#allocation3 + $0xa] }
 0x118   : > { %s391_s15 = sadd.s32 13, %s1636_s11  ;;  %s890_s23 = sshll.u32 %s358_s13, 4 }
 0x119   : > { %s1544_s24 = smov [#allocation2 + $0xc]   ;;  %s360_s16 = scalar_lea.hbm %s1907_s2, %s890_s23 }
 0x11a   : > { %s387_s29 = sshll.u32 %s1544_s24, 4  ;;  %s1339_s8 = scalar_lea.hbm %s360_s16, 16  ;;  %s1823_s29 = int_to_ptr.vmem [resolvable:$true] %s387_s29 }
 0x11b   : > { %p1340_p2 = scmp.ne.s32.totalorder %s360_s16, %s1339_s8  ;;  %p1342_p3 = scmp.lt.s32.totalorder %s360_s16, %s1907_s2 }
 0x11c   : > { %p1343_p5 = scmp.lt.s32.totalorder %s1658_s7, %s1339_s8 }
 0x11e   : > { %p1344_p11 = por %p1343_p5, %p1342_p3 }
 0x120   : > { %p1345_p12 = pnand %p1344_p11, %p1340_p2 }
 0x122   : > { %1348 = shalt.err (!%p1345_p12)  }
 0x123   : > { %s1349_s9 = scalar_lea.vmem %s1802_s30, 16  ;;  %p1354_p0 = scmp.lt.s32.totalorder %s1802_s30, %s1639_s14 }
 0x124   : > { %p1350_p13 = scmp.ne.s32.totalorder %s1802_s30, %s1349_s9  ;;  %p1355_p1 = scmp.lt.s32.totalorder %s1667_s12, %s1349_s9 }
 0x126   : > { %p1356_p4 = por %p1355_p1, %p1354_p0 }
 0x128   : > { %p1357_p7 = pnand %p1356_p4, %p1350_p13 }
 0x12a   : > { %1360 = shalt.err (!%p1357_p7)  }
 0x12b   : > { %373 = dma.hbm_to_vmem [thread:$0]  %s360_s16, 16, %s1802_s30, [#allocation3 + $0xb] }
 0x12c   : > { %s891_s13 = sshll.u32 %s1807_s17, 4  ;;  %s392_s25 = sld [smem:[#allocation6 + %s391_s15]] }
 0x12d   : > { %s377_s10 = scalar_lea.hbm %s1907_s2, %s891_s13 }
 0x12e   : > { %s1361_s27 = scalar_lea.hbm %s377_s10, 16  ;;  %p1364_p9 = scmp.lt.s32.totalorder %s377_s10, %s1907_s2 }
 0x12f   : > { %p1362_p8 = scmp.ne.s32.totalorder %s377_s10, %s1361_s27  ;;  %p1365_p10 = scmp.lt.s32.totalorder %s1658_s7, %s1361_s27 }
 0x131   : > { %p1366_p6 = por %p1365_p10, %p1364_p9 }
 0x133   : > { %p1367_p2 = pnand %p1366_p6, %p1362_p8 }
 0x135   : > { %1370 = shalt.err (!%p1367_p2)  }
 0x136   : > { %s1371_s30 = scalar_lea.vmem %s1823_s29, 16  ;;  %p1376_p5 = scmp.lt.s32.totalorder %s1823_s29, %s1639_s14 }
 0x137   : > { %p1372_p3 = scmp.ne.s32.totalorder %s1823_s29, %s1371_s30  ;;  %p1377_p11 = scmp.lt.s32.totalorder %s1667_s12, %s1371_s30 }
 0x139   : > { %p1378_p12 = por %p1377_p11, %p1376_p5 }
 0x13b   : > { %p1379_p13 = pnand %p1378_p12, %p1372_p3 }
 0x13d   : > { %1382 = shalt.err (!%p1379_p13)  }
 0x13e   : > { %390 = dma.hbm_to_vmem [thread:$0]  %s377_s10, 16, %s1823_s29, [#allocation3 + $0xc] }
 0x13f   : > { %s1545_s17 = smov [#allocation2 + $0xd]   ;;  %s408_s24 = sadd.s32 14, %s1636_s11 }
 0x140   : > { %s404_s15 = sshll.u32 %s1545_s17, 4  ;;  %s409_s6 = sld [smem:[#allocation6 + %s408_s24]]  ;;  %s405_s15 = int_to_ptr.vmem [resolvable:$true] %s404_s15 }
 0x141   : > { %s425_s18 = sadd.s32 15, %s1636_s11  ;;  %s892_s16 = sshll.u32 %s392_s25, 4 }
 0x142   : > { %s1546_s8 = smov [#allocation2 + $0xe]   ;;  %s394_s13 = scalar_lea.hbm %s1907_s2, %s892_s16 }
 0x143   : > { %s421_s0 = sshll.u32 %s1546_s8, 4  ;;  %s1383_s28 = scalar_lea.hbm %s394_s13, 16  ;;  %s1854_s0 = int_to_ptr.vmem [resolvable:$true] %s421_s0 }
 0x144   : > { %p1384_p0 = scmp.ne.s32.totalorder %s394_s13, %s1383_s28  ;;  %p1386_p1 = scmp.lt.s32.totalorder %s394_s13, %s1907_s2 }
 0x145   : > { %p1387_p4 = scmp.lt.s32.totalorder %s1658_s7, %s1383_s28 }
 0x147   : > { %p1388_p7 = por %p1387_p4, %p1386_p1 }
 0x149   : > { %p1389_p8 = pnand %p1388_p7, %p1384_p0 }
 0x14b   : > { %1392 = shalt.err (!%p1389_p8)  }
 0x14c   : > { %s1393_s11 = scalar_lea.vmem %s405_s15, 16  ;;  %p1398_p10 = scmp.lt.s32.totalorder %s405_s15, %s1639_s14 }
 0x14d   : > { %p1394_p9 = scmp.ne.s32.totalorder %s405_s15, %s1393_s11  ;;  %p1399_p6 = scmp.lt.s32.totalorder %s1667_s12, %s1393_s11 }
 0x14f   : > { %p1400_p2 = por %p1399_p6, %p1398_p10 }
 0x151   : > { %p1401_p3 = pnand %p1400_p2, %p1394_p9 }
 0x153   : > { %1404 = shalt.err (!%p1401_p3)  }
 0x154   : > { %407 = dma.hbm_to_vmem [thread:$0]  %s394_s13, 16, %s405_s15, [#allocation3 + $0xd] }
 0x155   : > { %s426_s29 = sld [smem:[#allocation6 + %s425_s18]]  ;;  %s893_s25 = sshll.u32 %s409_s6, 4 }
 0x156   : > { %s411_s23 = scalar_lea.hbm %s1907_s2, %s893_s25  ;;  %s1547_s30 = smov [#allocation2 + $0xf]  }
 0x157   : > { %s438_s17 = sshll.u32 %s1547_s30, 4  ;;  %s1405_s24 = scalar_lea.hbm %s411_s23, 16  ;;  %s439_s17 = int_to_ptr.vmem [resolvable:$true] %s438_s17 }
 0x158   : > { %p1406_p5 = scmp.ne.s32.totalorder %s411_s23, %s1405_s24  ;;  %p1408_p11 = scmp.lt.s32.totalorder %s411_s23, %s1907_s2 }
 0x159   : > { %p1409_p12 = scmp.lt.s32.totalorder %s1658_s7, %s1405_s24 }
 0x15b   : > { %p1410_p13 = por %p1409_p12, %p1408_p11 }
 0x15d   : > { %p1411_p0 = pnand %p1410_p13, %p1406_p5 }
 0x15f   : > { %1414 = shalt.err (!%p1411_p0)  }
 0x160   : > { %s1415_s15 = scalar_lea.vmem %s1854_s0, 16  ;;  %p1420_p4 = scmp.lt.s32.totalorder %s1854_s0, %s1639_s14 }
 0x161   : > { %p1416_p1 = scmp.ne.s32.totalorder %s1854_s0, %s1415_s15  ;;  %p1421_p7 = scmp.lt.s32.totalorder %s1667_s12, %s1415_s15 }
 0x163   : > { %p1422_p8 = por %p1421_p7, %p1420_p4 }
 0x165   : > { %p1423_p9 = pnand %p1422_p8, %p1416_p1 }
 0x167   : > { %1426 = shalt.err (!%p1423_p9)  }
 0x168   : > { %424 = dma.hbm_to_vmem [thread:$0]  %s411_s23, 16, %s1854_s0, [#allocation3 + $0xe] }
 0x169   : > { %s894_s6 = sshll.u32 %s426_s29, 4 }
 0x16a   : > { %s428_s9 = scalar_lea.hbm %s1907_s2, %s894_s6 }
 0x16b   : > { %s1427_s13 = scalar_lea.hbm %s428_s9, 16  ;;  %p1430_p6 = scmp.lt.s32.totalorder %s428_s9, %s1907_s2 }
 0x16c   : > { %p1428_p10 = scmp.ne.s32.totalorder %s428_s9, %s1427_s13  ;;  %p1431_p2 = scmp.lt.s32.totalorder %s1658_s7, %s1427_s13 }
 0x16e   : > { %p1432_p3 = por %p1431_p2, %p1430_p6 }
 0x170   : > { %p1433_p5 = pnand %p1432_p3, %p1428_p10 }
 0x172   : > { %1436 = shalt.err (!%p1433_p5)  }
 0x173   : > { %s1437_s27 = scalar_lea.vmem %s439_s17, 16  ;;  %p1442_p12 = scmp.lt.s32.totalorder %s439_s17, %s1639_s14 }
 0x174   : > { %p1438_p11 = scmp.ne.s32.totalorder %s439_s17, %s1437_s27  ;;  %p1443_p13 = scmp.lt.s32.totalorder %s1667_s12, %s1437_s27 }
 0x176   : > { %p1444_p0 = por %p1443_p13, %p1442_p12 }
 0x178   : > { %p1445_p1 = pnand %p1444_p0, %p1438_p11 }
 0x17a   : > { %1448 = shalt.err (!%p1445_p1)  }
 0x17b   : > { %441 = dma.hbm_to_vmem [thread:$0]  %s428_s9, 16, %s439_s17, [#allocation3 + $0xf] }
 0x17c   : > { %1487 = dma.done.wait [#allocation3], 16 }
 0x17d   : > { %1488 = vsyncadd [#allocation3], 4294967280 }
 0x17e   : > { %1489 = dma.done.wait [#allocation3 + $0x1], 16 }
 0x17f   : > { %1490 = vsyncadd [#allocation3 + $0x1], 4294967280 }
 0x180   : > { %1491 = dma.done.wait [#allocation3 + $0x2], 16 }
 0x181   : > { %1492 = vsyncadd [#allocation3 + $0x2], 4294967280 }
 0x182   : > { %1493 = dma.done.wait [#allocation3 + $0x3], 16 }
 0x183   : > { %1494 = vsyncadd [#allocation3 + $0x3], 4294967280 }
 0x184   : > { %1495 = dma.done.wait [#allocation3 + $0x4], 16 }
 0x185   : > { %1496 = vsyncadd [#allocation3 + $0x4], 4294967280 }
 0x186   : > { %1497 = dma.done.wait [#allocation3 + $0x5], 16 }
 0x187   : > { %1498 = vsyncadd [#allocation3 + $0x5], 4294967280 }
 0x188   : > { %1499 = dma.done.wait [#allocation3 + $0x6], 16 }
 0x189   : > { %1500 = vsyncadd [#allocation3 + $0x6], 4294967280 }
 0x18a   : > { %1501 = dma.done.wait [#allocation3 + $0x7], 16 }
 0x18b   : > { %1502 = vsyncadd [#allocation3 + $0x7], 4294967280 }
 0x18c   : > { %1503 = dma.done.wait [#allocation3 + $0x8], 16 }
 0x18d   : > { %1504 = vsyncadd [#allocation3 + $0x8], 4294967280 }
 0x18e   : > { %1505 = dma.done.wait [#allocation3 + $0x9], 16 }
 0x18f   : > { %1506 = vsyncadd [#allocation3 + $0x9], 4294967280 }
 0x190   : > { %1507 = dma.done.wait [#allocation3 + $0xa], 16 }
 0x191   : > { %1508 = vsyncadd [#allocation3 + $0xa], 4294967280 }
 0x192   : > { %1509 = dma.done.wait [#allocation3 + $0xb], 16 }
 0x193   : > { %1510 = vsyncadd [#allocation3 + $0xb], 4294967280 }
 0x194   : > { %1511 = dma.done.wait [#allocation3 + $0xc], 16 }
 0x195   : > { %1512 = vsyncadd [#allocation3 + $0xc], 4294967280 }
 0x196   : > { %1513 = dma.done.wait [#allocation3 + $0xd], 16 }
 0x197   : > { %1514 = vsyncadd [#allocation3 + $0xd], 4294967280 }
 0x198   : > { %1515 = dma.done.wait [#allocation3 + $0xe], 16 }
 0x199   : > { %1516 = vsyncadd [#allocation3 + $0xe], 4294967280 }
 0x19a   : > { %1517 = dma.done.wait [#allocation3 + $0xf], 16 }
 0x19b   : > { %1518 = vsyncadd [#allocation3 + $0xf], 4294967280  ;;  %v1548_v0 = vmov 0.0   ;;  %vm1549_vm0 = vmmov 0   ;;  %v478_v1 = vld [vmem:[#allocation2 + $0x8] sm:$0xff]  ;;  %v477_v2 = vld [vmem:[#allocation2] sm:$0xff] }
 0x19c   : > { %945 = vmatprep.subr.mxu0 %v1548_v0  ;;  %949 = vmatprep.mubr.msk.f32.mxu0 %vm1549_vm0, %v1548_v0  ;;  %s927_s14 = scalar_lea.vmem [#allocation7], %s1525_s21  ;;  %vm479_vm1 = vcmask 130048   ;;  %v1029_v4 = vld [vmem:[#allocation10 + $0x38] sm:$0xff]   ;;  %v1030_v5 = vld [vmem:[#allocation10 + $0x30] sm:$0xff]   ;;  %v1031_v6 = vld [vmem:[#allocation10 + $0x28] sm:$0xff]   ;;  %s930_s0 = scalar_lea.vmem [#allocation4], %s1525_s21 }
 0x19d   : > { %952 = vmatprep.subr.bf16.mxu1 %v1548_v0  ;;  %968 = vmatprep.mubr.msk.bf16.mxu1 %vm1549_vm0, %v1548_v0  ;;  %v929_v3 = vld [vmem:[%s927_s14 - $0x1] sm:$0x1]  ;;  %v1032_v7 = vld [vmem:[#allocation10 + $0x20] sm:$0xff]   ;;  %v1034_v9 = vld [vmem:[#allocation10 + $0x10] sm:$0xff]   ;;  %p906_p4 = scmp.ne.s32.totalorder %s1590_s22, 7 }
 0x19e   : > { %946 = vmatpush3.msra.mxu0 %v478_v1  ;;  %953 = vmatpush3.bf16.msra.mxu1 %v1029_v4  ;;  %v1033_v8 = vld [vmem:[#allocation10 + $0x18] sm:$0xff]   ;;  %v1035_v10 = vld [vmem:[#allocation10 + $0x8] sm:$0xff]   ;;  %v1036_v11 = vld [vmem:[#allocation10] sm:$0xff]  }
 0x19f   : > { %947 = vmatprep.subr.mxu0 %v1548_v0  ;;  %954 = vmatprep.subr.bf16.mxu1 %v1548_v0  ;;  %v570_v15 = vld [vmem:[%s1909_s4] sm:$0x1] }
 0x1a0   : > { %948 = vmatpush3.msra.mxu0 %v477_v2 }
 0x1a1   : > { %950 = vmatmul.mubr.msk.f32.vlgmr.msra.gmra.mxu0 %vm479_vm1, %v929_v3 }
 0x1a2   : > { %955 = vmatpush3.bf16.msra.mxu1 %v1030_v5 }
 0x1a3   : > { %956 = vmatprep.subr.bf16.mxu1 %v1548_v0 }
 0x1a6   : > { %957 = vmatpush3.bf16.msra.mxu1 %v1031_v6 }
 0x1a7   : > { %958 = vmatprep.subr.bf16.mxu1 %v1548_v0 }
 0x1aa   : > { %959 = vmatpush3.bf16.msra.mxu1 %v1032_v7 }
 0x1ab   : > { %960 = vmatprep.subr.bf16.mxu1 %v1548_v0 }
 0x1ae   : > { %961 = vmatpush3.bf16.msra.mxu1 %v1033_v8 }
 0x1af   : > { %962 = vmatprep.subr.bf16.mxu1 %v1548_v0 }
 0x1b2   : > { %963 = vmatpush3.bf16.msra.mxu1 %v1034_v9 }
 0x1b3   : > { %964 = vmatprep.subr.bf16.mxu1 %v1548_v0 }
 0x1b6   : > { %965 = vmatpush3.bf16.msra.mxu1 %v1035_v10 }
 0x1b7   : > { %966 = vmatprep.subr.bf16.mxu1 %v1548_v0 }
 0x1ba   : > { %967 = vmatpush3.bf16.msra.mxu1 %v1036_v11 }
 0x261   : > { %v549_v12 = vpop.f32.mrf.mxu0 }
 0x262   : > { %v553_v13 = vpack.c.bf16 %v549_v12, %v549_v12 }
 0x263   : > { %v951_v14 = vpop.f32.mrf.mxu0 }
 0x264   : > { %969 = vmatmul.mubr.bf16.vlgmr.msra.gmra.mxu1 %v553_v13 }
 0x324   : > { %v653_v16 = vpop.f32.mrf.mxu1 }
 0x325   : > { %v654_v17 = vadd.f32 %v653_v16, %v570_v15 }
 0x326   : > { %v970_v18 = vpop.f32.mrf.mxu1 }
 0x327   : > { %v659_v19 = vmax.f32 %v654_v17, 0.0  ;;  %666 = sbr.rel (%p906_p4) target bundleno = 822 (0x336), region = 108 }
 0x328   : > { %v656_v20 = vpop.f32.mrf.mxu1 }
 0x329   : > { %v660_v21 = vadd.f32 %v659_v19, %v549_v12 }
 0x32a   : > { %v971_v22 = vpop.f32.mrf.mxu1 }
 0x32b   : > { %932 = vst [vmem:[%s930_s0 - $0x1] sm:$0x1] %v660_v21 }
 0x332   : > { %v667_v23 = vld [vmem:[#allocation4] sm:$0xff] }
 0x333   : > { %v668_v24 = vpack.c.bf16 %v667_v23, %v667_v23 }
 0x335   : > { %669 = vst [vmem:[#allocation12] sm:$0xf] %v668_v24 }
 0x336 PF: > { %p995_p7 = scmp.eq.s32.totalorder %s1590_s22, 7  ;;  %s1550_s11 = smov [#allocation12]  }
 0x337   : > { %s677_s29 = sshll.u32 %s1550_s11, 4  ;;  %s678_s29 = int_to_ptr.vmem [resolvable:$true] %s677_s29 }
 0x338   : > { %s1449_s25 = scalar_lea.vmem %s678_s29, 64  ;;  %p1456_p6 = scmp.lt.s32.totalorder %s678_s29, %s678_s29 }
 0x339   : > { %p1450_p8 = scmp.ne.s32.totalorder %s678_s29, %s1449_s25  ;;  %p1457_p2 = scmp.lt.s32.totalorder %s1449_s25, %s1449_s25 }
 0x33b   : > { %p1451_p9 = pnand %p1450_p8, %p995_p7  ;;  %p1458_p3 = por %p1457_p2, %p1456_p6 }
 0x33d   : > { %p1452_p10 = pneg %p1451_p9 }
 0x33f   : > { %p1459_p5 = pnand %p1458_p3, %p1452_p10 }
 0x341   : > { %1462 = shalt.err (!%p1459_p5)
}
 0x342   : > { %981 = dma.vmem_to_hbm [thread:$0]  (%p995_p7), %s678_s29, 64, %s1910_s5, [#allocation9]  }
 0x343   : > { %1520 = dma.done.wait (%p995_p7), [#allocation9], 64  }
 0x344   : > { %1522 = vsyncadd (%p995_p7), [#allocation9], 4294967232 }
 0x345 PF: > { %s22_s21 = sadd.s32 1, %s1525_s21  }
 0x346   : > { %p19_p11 = scmp.ge.s32.totalorder %s22_s21, 10  }
 0x348   :  { %21 = sbr.rel (!%p19_p11) target bundleno = 8 (0x8), region = 196 }
 0x34d   :  { %690 = vsyncpa [#allocation8], 1 }
 0x34e   :  { %692 = vsyncpa [#allocation8 + $0x1], 1 }
 0x34f   :  { %693 = vsyncpa [#allocation11], 1 }
 0x350   :  { %694 = vsyncpa [#allocation9], 1 }
 0x351   :  { %696 = vsyncpa [#allocation9 + $0x1], 1 }
 0x352   :  { %697 = vsyncmov [#allocation3] }
 0x355   :  { %s698_s23 = vpop.sfrf %697 }
 0x356   :  { %p911_p12 = scmp.ne.s32.totalorder %s698_s23, 0 }
 0x358   :  { %702 = shalt.err (%p911_p12)  }
 0x359   :  { %704 = vsyncmov [#allocation3 + $0x1] }
 0x35c   :  { %s705_s30 = vpop.sfrf %704 }
 0x35d   :  { %p912_p13 = scmp.ne.s32.totalorder %s705_s30, 0 }
 0x35f   :  { %709 = shalt.err (%p912_p13)  }
 0x360   :  { %711 = vsyncmov [#allocation3 + $0x2] }
 0x363   :  { %s712_s22 = vpop.sfrf %711 }
 0x364   :  { %p913_p0 = scmp.ne.s32.totalorder %s712_s22, 0 }
 0x366   :  { %716 = shalt.err (%p913_p0)  }
 0x367   :  { %718 = vsyncmov [#allocation3 + $0x3] }
 0x36a   :  { %s719_s21 = vpop.sfrf %718 }
 0x36b   :  { %p914_p1 = scmp.ne.s32.totalorder %s719_s21, 0 }
 0x36d   :  { %723 = shalt.err (%p914_p1)  }
 0x36e   :  { %725 = vsyncmov [#allocation3 + $0x4] }
 0x371   :  { %s726_s1 = vpop.sfrf %725 }
 0x372   :  { %p915_p4 = scmp.ne.s32.totalorder %s726_s1, 0 }
 0x374   :  { %730 = shalt.err (%p915_p4)  }
 0x375   :  { %732 = vsyncmov [#allocation3 + $0x5] }
 0x378   :  { %s733_s2 = vpop.sfrf %732 }
 0x379   :  { %p916_p7 = scmp.ne.s32.totalorder %s733_s2, 0 }
 0x37b   :  { %737 = shalt.err (%p916_p7)  }
 0x37c   :  { %739 = vsyncmov [#allocation3 + $0x6] }
 0x37f   :  { %s740_s3 = vpop.sfrf %739 }
 0x380   :  { %p917_p8 = scmp.ne.s32.totalorder %s740_s3, 0 }
 0x382   :  { %744 = shalt.err (%p917_p8)  }
 0x383   :  { %746 = vsyncmov [#allocation3 + $0x7] }
 0x386   :  { %s747_s4 = vpop.sfrf %746 }
 0x387   :  { %p918_p9 = scmp.ne.s32.totalorder %s747_s4, 0 }
 0x389   :  { %751 = shalt.err (%p918_p9)  }
 0x38a   :  { %753 = vsyncmov [#allocation3 + $0x8] }
 0x38d   :  { %s754_s5 = vpop.sfrf %753 }
 0x38e   :  { %p919_p10 = scmp.ne.s32.totalorder %s754_s5, 0 }
 0x390   :  { %758 = shalt.err (%p919_p10)  }
 0x391   :  { %760 = vsyncmov [#allocation3 + $0x9] }
 0x394   :  { %s761_s17 = vpop.sfrf %760 }
 0x395   :  { %p920_p6 = scmp.ne.s32.totalorder %s761_s17, 0 }
 0x397   :  { %765 = shalt.err (%p920_p6)  }
 0x398   :  { %767 = vsyncmov [#allocation3 + $0xa] }
 0x39b   :  { %s768_s24 = vpop.sfrf %767 }
 0x39c   :  { %p921_p2 = scmp.ne.s32.totalorder %s768_s24, 0 }
 0x39e   :  { %772 = shalt.err (%p921_p2)  }
 0x39f   :  { %774 = vsyncmov [#allocation3 + $0xb] }
 0x3a2   :  { %s775_s16 = vpop.sfrf %774 }
 0x3a3   :  { %p922_p3 = scmp.ne.s32.totalorder %s775_s16, 0 }
 0x3a5   :  { %779 = shalt.err (%p922_p3)  }
 0x3a6   :  { %781 = vsyncmov [#allocation3 + $0xc] }
 0x3a9   :  { %s782_s8 = vpop.sfrf %781 }
 0x3aa   :  { %p923_p5 = scmp.ne.s32.totalorder %s782_s8, 0 }
 0x3ac   :  { %786 = shalt.err (%p923_p5)  }
 0x3ad   :  { %788 = vsyncmov [#allocation3 + $0xd] }
 0x3b0   :  { %s789_s15 = vpop.sfrf %788 }
 0x3b1   :  { %p924_p11 = scmp.ne.s32.totalorder %s789_s15, 0 }
 0x3b3   :  { %793 = shalt.err (%p924_p11)  }
 0x3b4   :  { %795 = vsyncmov [#allocation3 + $0xe] }
 0x3b7   :  { %s796_s6 = vpop.sfrf %795 }
 0x3b8   :  { %p925_p12 = scmp.ne.s32.totalorder %s796_s6, 0 }
 0x3ba   :  { %800 = shalt.err (%p925_p12)  }
 0x3bb   :  { %802 = vsyncmov [#allocation3 + $0xf] }
 0x3be   :  { %s803_s18 = vpop.sfrf %802 }
 0x3bf   :  { %p926_p13 = scmp.ne.s32.totalorder %s803_s18, 0 }
 0x3c1   :  { %807 = shalt.err (%p926_p13)  }

</bundles_post_ra>
